<compile_context>
chip_gen: v7x
topology: tpu7x:2x2x1
jax: 0.10.0
libtpu: 0.0.40
codegen_flags: <defaults>
</compile_context>

<pallas_src>
import functools
import numpy as np

import jax
import jax.numpy as jnp
from jax.experimental import pallas as pl
from jax.experimental.pallas import tpu as pltpu


# Tile targets: (256, 256, 512) f32/bf16 blocks ~ a few MiB double-buffered,
# safe for v7x 64 MiB VMEM and the default scoped limit on all generations.
_TM, _TN, _TK = 256, 256, 512
_LN_TM = 256


def _pick_tile(dim, target, align):
    """Largest tile <= target that divides `dim` and is a multiple of `align`;
    falls back to the full dimension (always a legal block size)."""
    if dim <= target:
        return dim
    t = (target // align) * align
    while t >= align:
        if dim % t == 0:
            return t
        t -= align
    return dim


# ----------------------------- Pallas kernels ------------------------------

def _linear_kernel(x_ref, w_ref, o_ref, acc_ref, *, relu):
    k = pl.program_id(2)

    @pl.when(k == 0)
    def _():
        acc_ref[...] = jnp.zeros_like(acc_ref)

    acc_ref[...] += jnp.dot(
        x_ref[...].astype(jnp.bfloat16),
        w_ref[...].astype(jnp.bfloat16),
        preferred_element_type=jnp.float32)

    @pl.when(k == pl.num_programs(2) - 1)
    def _():
        out = acc_ref[...]
        if relu:
            out = jnp.maximum(out, 0.0)
        o_ref[...] = out.astype(o_ref.dtype)


def _linear_bias_kernel(x_ref, w_ref, b_ref, o_ref, acc_ref, *, relu):
    k = pl.program_id(2)

    @pl.when(k == 0)
    def _():
        acc_ref[...] = jnp.zeros_like(acc_ref)

    acc_ref[...] += jnp.dot(
        x_ref[...].astype(jnp.bfloat16),
        w_ref[...].astype(jnp.bfloat16),
        preferred_element_type=jnp.float32)

    @pl.when(k == pl.num_programs(2) - 1)
    def _():
        out = acc_ref[...] + b_ref[...]
        if relu:
            out = jnp.maximum(out, 0.0)
        o_ref[...] = out.astype(o_ref.dtype)


def pallas_linear(x, w, b=None, relu=False):
    """x: (M, K) f32, w: (K, N) bf16/f32, optional bias (N,) -> (M, N) f32.

    Tiled matmul: bf16 MXU operands, f32 VMEM accumulator, K-reduction last in
    the grid, M/N axes "parallel" for megacore sharding."""
    M, K = x.shape
    Kw, N = w.shape
    assert K == Kw
    tm = _pick_tile(M, _TM, 8)
    tn = _pick_tile(N, _TN, 128)
    tk = _pick_tile(K, _TK, 128)
    grid = (M // tm, N // tn, K // tk)

    cost = pl.CostEstimate(
        flops=2 * M * N * K,
        transcendentals=0,
        bytes_accessed=(M * K * x.dtype.itemsize
                        + K * N * w.dtype.itemsize
                        + M * N * 4))

    in_specs = [
        pl.BlockSpec((tm, tk), lambda i, j, k: (i, k)),
        pl.BlockSpec((tk, tn), lambda i, j, k: (k, j)),
    ]
    args = [x, w]
    if b is None:
        kernel = functools.partial(_linear_kernel, relu=relu)
    else:
        kernel = functools.partial(_linear_bias_kernel, relu=relu)
        in_specs.append(pl.BlockSpec((1, tn), lambda i, j, k: (0, j)))
        args.append(b.reshape(1, N).astype(jnp.float32))

    return pl.pallas_call(
        kernel,
        grid_spec=pltpu.PrefetchScalarGridSpec(
            num_scalar_prefetch=0,
            grid=grid,
            in_specs=in_specs,
            out_specs=pl.BlockSpec((tm, tn), lambda i, j, k: (i, j)),
            scratch_shapes=[pltpu.VMEM((tm, tn), jnp.float32)]),
        out_shape=jax.ShapeDtypeStruct((M, N), jnp.float32),
        compiler_params=pltpu.CompilerParams(
            dimension_semantics=("parallel", "parallel", "arbitrary")),
        cost_estimate=cost,
    )(*args)


def _ln_kernel(x_ref, g_ref, b_ref, o_ref, *, eps):
    x = x_ref[...]
    mu = jnp.mean(x, axis=-1, keepdims=True)
    xc = x - mu
    var = jnp.mean(xc * xc, axis=-1, keepdims=True)
    o_ref[...] = xc * jax.lax.rsqrt(var + eps) * g_ref[...] + b_ref[...]


def _add_ln_kernel(x_ref, r_ref, g_ref, b_ref, o_ref, *, eps):
    x = x_ref[...] + r_ref[...]           # fused residual / positional add
    mu = jnp.mean(x, axis=-1, keepdims=True)
    xc = x - mu
    var = jnp.mean(xc * xc, axis=-1, keepdims=True)
    o_ref[...] = xc * jax.lax.rsqrt(var + eps) * g_ref[...] + b_ref[...]


def pallas_layer_norm(x, gamma, beta, residual=None, eps=1e-6):
    """Row-tiled LayerNorm over the last dim (torch biased-variance, eps=1e-6);
    optionally fuses an elementwise add (residual / positional encoding) to cut
    HBM round-trips."""
    # TODO(synk): sublayer LayerNorm eps inside MultiHeadAttention/FFN is not
    # shown in the spec; 1e-6 is used everywhere (matches Encoder/Decoder LN).
    M, D = x.shape
    tm = _pick_tile(M, _LN_TM, 8)
    grid = (M // tm,)
    g = gamma.reshape(1, D).astype(jnp.float32)
    b = beta.reshape(1, D).astype(jnp.float32)
    row_spec = pl.BlockSpec((tm, D), lambda i: (i, 0))
    vec_spec = pl.BlockSpec((1, D), lambda i: (0, 0))
    if residual is None:
        kernel = functools.partial(_ln_kernel, eps=eps)
        in_specs = [row_spec, vec_spec, vec_spec]
        args = (x, g, b)
    else:
        kernel = functools.partial(_add_ln_kernel, eps=eps)
        in_specs = [row_spec, row_spec, vec_spec, vec_spec]
        args = (x, residual, g, b)
    return pl.pallas_call(
        kernel,
        grid=grid,
        in_specs=in_specs,
        out_specs=row_spec,
        out_shape=jax.ShapeDtypeStruct((M, D), jnp.float32),
        compiler_params=pltpu.CompilerParams(
            dimension_semantics=("parallel",)),
    )(*args)


def _attention_kernel(q_ref, k_ref, v_ref, bias_ref, o_ref, *, scale, n_head,
                      d_k, d_v):
    q = q_ref[0]          # (Lq, H*dk) f32, head-merged
    k = k_ref[0]          # (Lk, H*dk) f32
    v = v_ref[0]          # (Lk, H*dv) f32
    bias = bias_ref[0]    # (Lq, Lk) f32 additive mask (0 keep / -1e9 masked)
    outs = []
    for h in range(n_head):                              # static unroll over heads
        qh = q[:, h * d_k:(h + 1) * d_k].astype(jnp.bfloat16)
        kh = k[:, h * d_k:(h + 1) * d_k].astype(jnp.bfloat16)
        vh = v[:, h * d_v:(h + 1) * d_v].astype(jnp.bfloat16)
        s = jnp.dot(qh, kh.T, preferred_element_type=jnp.float32) * scale
        s = s + bias                                     # additive mask (no where/select)
        s = s - jnp.max(s, axis=-1, keepdims=True)       # softmax in f32
        p = jnp.exp(s)
        inv = pl.reciprocal(jnp.sum(p, axis=-1, keepdims=True), approx=True)
        p = (p * inv).astype(jnp.bfloat16)
        outs.append(jnp.dot(p, vh, preferred_element_type=jnp.float32))
    # one head-merged, lane-dense store
    o_ref[0] = jnp.concatenate(outs, axis=-1)


def pallas_attention(q, k, v, bias, n_head, d_k, d_v):
    """q: (B,Lq,H*dk), k: (B,Lk,H*dk), v: (B,Lk,H*dv), bias: (B,Lq,Lk) f32.
    Returns (B, Lq, H*dv).  All heads are processed per grid step so inputs and
    the output stay head-merged (lane-dense); grid over batch is parallel."""
    B, Lq, HDk = q.shape
    Lk = k.shape[1]
    HDv = v.shape[2]
    scale = 1.0 / float(np.sqrt(d_k))
    cost = pl.CostEstimate(
        flops=2 * B * n_head * Lq * Lk * (d_k + d_v),
        transcendentals=B * n_head * Lq * Lk,
        bytes_accessed=4 * (B * Lq * HDk + B * Lk * HDk + B * Lk * HDv
                            + B * Lq * Lk + B * Lq * HDv))
    return pl.pallas_call(
        functools.partial(_attention_kernel, scale=scale, n_head=n_head,
                          d_k=d_k, d_v=d_v),
        grid=(B,),
        in_specs=[
            pl.BlockSpec((1, Lq, HDk), lambda b: (b, 0, 0)),
            pl.BlockSpec((1, Lk, HDk), lambda b: (b, 0, 0)),
            pl.BlockSpec((1, Lk, HDv), lambda b: (b, 0, 0)),
            pl.BlockSpec((1, Lq, Lk), lambda b: (b, 0, 0)),
        ],
        out_specs=pl.BlockSpec((1, Lq, HDv), lambda b: (b, 0, 0)),
        out_shape=jax.ShapeDtypeStruct((B, Lq, HDv), jnp.float32),
        compiler_params=pltpu.CompilerParams(
            dimension_semantics=("parallel",)),
        cost_estimate=cost,
    )(q, k, v, bias)


# --------------------------- model building blocks --------------------------

def sinusoid_table(max_len, d_model):
    pos = np.arange(max_len)[:, None].astype(np.float64)
    idx = np.arange(d_model)[None, :].astype(np.float64)
    angle = pos / np.power(10000.0, 2.0 * (idx // 2) / d_model)
    table = np.zeros((max_len, d_model), np.float64)
    table[:, 0::2] = np.sin(angle[:, 0::2])
    table[:, 1::2] = np.cos(angle[:, 1::2])
    return jnp.asarray(table, jnp.float32)


def mask_to_bias(mask, B, Lq, Lk):
    """bool mask (broadcastable to (B,Lq,Lk)) -> additive f32 bias, built once
    per mask and reused across all layers."""
    return jnp.where(jnp.broadcast_to(mask, (B, Lq, Lk)),
                     0.0, -1e9).astype(jnp.float32)


def multi_head_attention(x_q, x_kv, bias, p, n_head, d_k, d_v):
    """Post-LN multi-head attention block (residual + LayerNorm fused)."""
    B, Lq, D = x_q.shape
    Lk = x_kv.shape[1]
    Hk, Hv = n_head * d_k, n_head * d_v
    residual = x_q.reshape(B * Lq, D)

    if x_q is x_kv:
        # self-attention: fused Q|K|V projection — one pass over x, one launch
        qkv = pallas_linear(x_q.reshape(B * Lq, D), p["w_qkv"])
        q, kv = qkv[:, :Hk], qkv[:, Hk:]
    else:
        # cross-attention: Q from decoder stream, fused K|V from encoder output
        q = pallas_linear(x_q.reshape(B * Lq, D), p["w_qkv"][:, :Hk])
        kv = pallas_linear(x_kv.reshape(B * Lk, D), p["w_qkv"][:, Hk:])
    k, v = kv[:, :Hk], kv[:, Hk:]

    q = q.reshape(B, Lq, Hk)
    k = k.reshape(B, Lk, Hk)
    v = v.reshape(B, Lk, Hv)

    o = pallas_attention(q, k, v, bias, n_head, d_k, d_v)     # (B, Lq, H*dv)
    o = pallas_linear(o.reshape(B * Lq, Hv), p["wo"])
    # dropout = identity (eval); residual add + LayerNorm fused in one kernel
    out = pallas_layer_norm(o, p["ln_g"], p["ln_b"], residual=residual)
    return out.reshape(B, Lq, D)


def positionwise_ffn(x, p):
    B, L, D = x.shape
    residual = x.reshape(B * L, D)
    h = pallas_linear(x.reshape(B * L, D), p["w1"], p["b1"], relu=True)
    h = pallas_linear(h, p["w2"], p["b2"])
    # dropout = identity (eval); residual add + LayerNorm fused
    out = pallas_layer_norm(h, p["ln_g"], p["ln_b"], residual=residual)
    return out.reshape(B, L, D)


def embed_posenc_norm(tokens, params, D):
    """Embedding gather (glue) + fused (pos-encoding add + LayerNorm) kernel."""
    B, L = tokens.shape
    x = params["emb"][tokens]                                 # (B, L, D) gather (glue)
    pos = jnp.broadcast_to(params["pos_table"][:L][None, :, :], (B, L, D))
    # dropout = identity (eval); positional add fused into the LayerNorm pass
    x = pallas_layer_norm(x.reshape(B * L, D), params["ln_g"], params["ln_b"],
                          residual=pos.reshape(B * L, D))
    return x.reshape(B, L, D)


def encoder_forward(src, src_bias, params, cfg):
    x = embed_posenc_norm(src, params, cfg["d_model"])
    for lp in params["layers"]:
        x = multi_head_attention(x, x, src_bias, lp["attn"],
                                 cfg["n_head"], cfg["d_k"], cfg["d_v"])
        x = positionwise_ffn(x, lp["ffn"])
    return x


def decoder_forward(tgt, tgt_bias, enc_out, cross_bias, params, cfg):
    x = embed_posenc_norm(tgt, params, cfg["d_model"])
    for lp in params["layers"]:
        x = multi_head_attention(x, x, tgt_bias, lp["self_attn"],
                                 cfg["n_head"], cfg["d_k"], cfg["d_v"])
        x = multi_head_attention(x, enc_out, cross_bias, lp["cross_attn"],
                                 cfg["n_head"], cfg["d_k"], cfg["d_v"])
        x = positionwise_ffn(x, lp["ffn"])
    return x


def get_pad_mask(seq, pad_idx):
    return (seq != pad_idx)[:, None, :]                      # (B, 1, L)


def get_lookahead_mask(seq):
    L = seq.shape[1]
    return jnp.tril(jnp.ones((1, L, L), dtype=bool))         # (1, L, L)


def transformer_forward(src, tgt, params, cfg):
    B, Ls = src.shape
    Lt = tgt.shape[1]
    src_mask = get_pad_mask(src, cfg["pad_idx"])                            # (B,1,Ls)
    tgt_mask = get_pad_mask(tgt, cfg["pad_idx"]) & get_lookahead_mask(tgt)  # (B,Lt,Lt)

    # additive biases built once per mask and shared by every layer
    enc_bias = mask_to_bias(src_mask, B, Ls, Ls)      # encoder self-attn
    dec_bias = mask_to_bias(tgt_mask, B, Lt, Lt)      # decoder self-attn (causal+pad)
    cross_bias = mask_to_bias(src_mask, B, Lt, Ls)    # decoder cross-attn

    enc_out = encoder_forward(src, enc_bias, params["encoder"], cfg)
    dec_out = decoder_forward(tgt, dec_bias, enc_out, cross_bias,
                              params["decoder"], cfg)
    B, Lt, D = dec_out.shape
    logits = pallas_linear(dec_out.reshape(B * Lt, D), params["fc_w"])
    return logits.reshape(B, Lt, cfg["vocab_size"])


# ------------------------------ parameter init ------------------------------

def init_params(key, cfg):
    keys = iter(jax.random.split(key, 512))

    def nrm(shape, scale=0.02, dtype=jnp.bfloat16):
        # matmul weights stored in bf16 (MXU-native, half the HBM bytes);
        # LayerNorm params / biases / embeddings stay f32.
        w = scale * jax.random.normal(next(keys), shape, jnp.float32)
        return w.astype(dtype)

    D, dk, dv, H, dh = (cfg["d_model"], cfg["d_k"], cfg["d_v"],
                        cfg["n_head"], cfg["d_hid"])

    def mha_params():
        # wq | wk | wv pre-concatenated so self-attention is one fused matmul
        return dict(w_qkv=nrm((D, H * dk + H * dk + H * dv)),
                    wo=nrm((H * dv, D)),
                    ln_g=jnp.ones((D,), jnp.float32),
                    ln_b=jnp.zeros((D,), jnp.float32))

    def ffn_params():
        return dict(w1=nrm((D, dh)), b1=jnp.zeros((dh,), jnp.float32),
                    w2=nrm((dh, D)), b2=jnp.zeros((D,), jnp.float32),
                    ln_g=jnp.ones((D,), jnp.float32),
                    ln_b=jnp.zeros((D,), jnp.float32))

    def stack(max_len, is_decoder):
        emb = nrm((cfg["vocab_size"], D), dtype=jnp.float32)
        emb = emb.at[cfg["pad_idx"]].set(0.0)                # padding_idx row
        layers = []
        for _ in range(cfg["n_layers"]):
            if is_decoder:
                layers.append(dict(self_attn=mha_params(),
                                   cross_attn=mha_params(),
                                   ffn=ffn_params()))
            else:
                layers.append(dict(attn=mha_params(), ffn=ffn_params()))
        return dict(emb=emb,
                    pos_table=sinusoid_table(max_len, D),
                    ln_g=jnp.ones((D,), jnp.float32),
                    ln_b=jnp.zeros((D,), jnp.float32),
                    layers=layers)

    return dict(encoder=stack(cfg["keyword_max_length"], False),
                decoder=stack(cfg["description_max_length"], True),
                fc_w=nrm((D, cfg["vocab_size"])))


# ----------------------------------- main -----------------------------------

if __name__ == "__main__":
    cfg = dict(
        keyword_max_length=16,
        description_max_length=16,
        vocab_size=32,
        pad_idx=0,
        d_model=32,
        d_k=8,
        d_v=8,
        d_hid=64,
        n_head=4,
        n_layers=2,
    )

    key = jax.random.PRNGKey(0)
    k_params, k_src, k_tgt = jax.random.split(key, 3)
    params = init_params(k_params, cfg)

    B, Ls, Lt = 2, 8, 8
    src = jax.random.randint(k_src, (B, Ls), 1, cfg["vocab_size"], jnp.int32)
    tgt = jax.random.randint(k_tgt, (B, Lt), 1, cfg["vocab_size"], jnp.int32)
    # put some padding tokens in to exercise the masks
    src = src.at[0, -2:].set(cfg["pad_idx"])
    tgt = tgt.at[1, -3:].set(cfg["pad_idx"])

    # whole forward under one jit so XLA can schedule glue around the kernels
    fwd = jax.jit(lambda s, t, p: transformer_forward(s, t, p, cfg))
    out = fwd(src, tgt, params)
    out = jax.block_until_ready(out)
    assert out.shape == (B, Lt, cfg["vocab_size"]), out.shape
    assert bool(jnp.all(jnp.isfinite(out)))
    print("KERNEL_OK")
</pallas_src>

<mosaic_0001>
module attributes {stable_mosaic.version = 11 : i64} {
  func.func @_linear_kernel(%arg0: i32, %arg1: i32, %arg2: i32, %arg3: memref<16x32xf32, #tpu.memory_space<vmem>>, %arg4: memref<32x32xbf16, #tpu.memory_space<vmem>>, %arg5: memref<16x32xf32, #tpu.memory_space<vmem>>, %arg6: memref<16x32xf32, #tpu.memory_space<vmem>>) attributes {dimension_semantics = [#tpu.dimension_semantics<parallel>, #tpu.dimension_semantics<parallel>, #tpu.dimension_semantics<arbitrary>], iteration_bounds = array<i64: 1, 1, 1>, scalar_prefetch = 0 : i64, scratch_operands = 1 : i64, tpu.core_type = #tpu.core_type<tc>, window_params = [{transform_indices = @transform_0, window_bounds = array<i64: 16, 32>}, {transform_indices = @transform_1, window_bounds = array<i64: 32, 32>}, {transform_indices = @transform_2, window_bounds = array<i64: 16, 32>}]} {
    %c0_i32 = arith.constant 0 : i32
    %0 = arith.cmpi eq, %arg2, %c0_i32 : i32
    %1 = arith.extui %0 : i1 to i32
    %c0_i32_0 = arith.constant 0 : i32
    %2 = arith.cmpi ne, %1, %c0_i32_0 : i32
    scf.if %2 {
      %cst_10 = arith.constant 0.000000e+00 : f32
      %13 = vector.broadcast %cst_10 : f32 to vector<16x32xf32>
      %c0_11 = arith.constant 0 : index
      %c0_12 = arith.constant 0 : index
      %14 = vector.load %arg6[%c0_11, %c0_12] : memref<16x32xf32, #tpu.memory_space<vmem>>, vector<16x32xf32>
      tpu.vector_store %arg6[%c0_11, %c0_12], %13 {strides = array<i32>} : memref<16x32xf32, #tpu.memory_space<vmem>>, vector<16x32xf32>,
    } else {
    }
    %c0 = arith.constant 0 : index
    %c0_1 = arith.constant 0 : index
    %3 = vector.load %arg6[%c0, %c0_1] : memref<16x32xf32, #tpu.memory_space<vmem>>, vector<16x32xf32>
    %c0_2 = arith.constant 0 : index
    %c0_3 = arith.constant 0 : index
    %4 = vector.load %arg3[%c0_2, %c0_3] : memref<16x32xf32, #tpu.memory_space<vmem>>, vector<16x32xf32>
    %5 = arith.truncf %4 : vector<16x32xf32> to vector<16x32xbf16>
    %c0_4 = arith.constant 0 : index
    %c0_5 = arith.constant 0 : index
    %6 = vector.load %arg4[%c0_4, %c0_5] : memref<32x32xbf16, #tpu.memory_space<vmem>>, vector<32x32xbf16>
    %cst = arith.constant dense<0.000000e+00> : vector<16x32xf32>
    %7 = tpu.matmul %5, %6, %cst {dimension_numbers = #tpu.dot_dimension_numbers<[1], [0], [0], [1], [0, 0, 1, 1], [], []>} : vector<16x32xbf16>, vector<32x32xbf16>, vector<16x32xf32> -> vector<16x32xf32>
    %8 = arith.addf %3, %7 : vector<16x32xf32>
    %c0_6 = arith.constant 0 : index
    %c0_7 = arith.constant 0 : index
    %9 = vector.load %arg6[%c0_6, %c0_7] : memref<16x32xf32, #tpu.memory_space<vmem>>, vector<16x32xf32>
    tpu.vector_store %arg6[%c0_6, %c0_7], %8 {strides = array<i32>} : memref<16x32xf32, #tpu.memory_space<vmem>>, vector<16x32xf32>,
    %c0_i32_8 = arith.constant 0 : i32
    %10 = arith.cmpi eq, %arg2, %c0_i32_8 : i32
    %11 = arith.extui %10 : i1 to i32
    %c0_i32_9 = arith.constant 0 : i32
    %12 = arith.cmpi ne, %11, %c0_i32_9 : i32
    scf.if %12 {
      %c0_10 = arith.constant 0 : index
      %c0_11 = arith.constant 0 : index
      %13 = vector.load %arg6[%c0_10, %c0_11] : memref<16x32xf32, #tpu.memory_space<vmem>>, vector<16x32xf32>
      %c0_12 = arith.constant 0 : index
      %c0_13 = arith.constant 0 : index
      %14 = vector.load %arg5[%c0_12, %c0_13] : memref<16x32xf32, #tpu.memory_space<vmem>>, vector<16x32xf32>
      tpu.vector_store %arg5[%c0_12, %c0_13], %13 {strides = array<i32>} : memref<16x32xf32, #tpu.memory_space<vmem>>, vector<16x32xf32>,
    } else {
    }
    return
  }
  func.func @transform_0(%arg0: i32, %arg1: i32, %arg2: i32) -> (i32, i32) {
    %c0_i32 = arith.constant 0 : i32
    return %arg0, %arg2 : i32, i32
  }
  func.func @transform_1(%arg0: i32, %arg1: i32, %arg2: i32) -> (i32, i32) {
    %c0_i32 = arith.constant 0 : i32
    return %arg2, %arg1 : i32, i32
  }
  func.func @transform_2(%arg0: i32, %arg1: i32, %arg2: i32) -> (i32, i32) {
    %c0_i32 = arith.constant 0 : i32
    return %arg0, %arg1 : i32, i32
  }
}

module attributes {stable_mosaic.version = 11 : i64} {
  func.func @_add_ln_kernel(%arg0: i32, %arg1: memref<16x32xf32, #tpu.memory_space<vmem>>, %arg2: memref<16x32xf32, #tpu.memory_space<vmem>>, %arg3: memref<1x32xf32, #tpu.memory_space<vmem>>, %arg4: memref<1x32xf32, #tpu.memory_space<vmem>>, %arg5: memref<16x32xf32, #tpu.memory_space<vmem>>) attributes {dimension_semantics = [#tpu.dimension_semantics<parallel>], iteration_bounds = array<i64: 1>, scalar_prefetch = 0 : i64, scratch_operands = 0 : i64, tpu.core_type = #tpu.core_type<tc>, window_params = [{transform_indices = @transform_0, window_bounds = array<i64: 16, 32>}, {transform_indices = @transform_1, window_bounds = array<i64: 16, 32>}, {pipeline_mode = #tpu.pipeline_mode<synchronous>, transform_indices = @transform_2, window_bounds = array<i64: 1, 32>}, {pipeline_mode = #tpu.pipeline_mode<synchronous>, transform_indices = @transform_3, window_bounds = array<i64: 1, 32>}, {transform_indices = @transform_4, window_bounds = array<i64: 16, 32>}]} {
    %c0 = arith.constant 0 : index
    %c0_0 = arith.constant 0 : index
    %0 = vector.load %arg1[%c0, %c0_0] : memref<16x32xf32, #tpu.memory_space<vmem>>, vector<16x32xf32>
    %c0_1 = arith.constant 0 : index
    %c0_2 = arith.constant 0 : index
    %1 = vector.load %arg2[%c0_1, %c0_2] : memref<16x32xf32, #tpu.memory_space<vmem>>, vector<16x32xf32>
    %2 = arith.addf %0, %1 : vector<16x32xf32>
    %cst = arith.constant dense<0.000000e+00> : vector<16xf32>
    %3 = vector.multi_reduction <add>, %2, %cst [1] : vector<16x32xf32> to vector<16xf32>
    %4 = vector.shape_cast %3 : vector<16xf32> to vector<16x1xf32>
    %cst_3 = arith.constant 3.200000e+01 : f32
    %5 = vector.broadcast %cst_3 : f32 to vector<16x1xf32>
    %6 = arith.divf %4, %5 : vector<16x1xf32>
    %7 = vector.broadcast %6 : vector<16x1xf32> to vector<16x32xf32>
    %8 = arith.subf %2, %7 : vector<16x32xf32>
    %9 = arith.mulf %8, %8 : vector<16x32xf32>
    %cst_4 = arith.constant dense<0.000000e+00> : vector<16xf32>
    %10 = vector.multi_reduction <add>, %9, %cst_4 [1] : vector<16x32xf32> to vector<16xf32>
    %11 = vector.shape_cast %10 : vector<16xf32> to vector<16x1xf32>
    %cst_5 = arith.constant 3.200000e+01 : f32
    %12 = vector.broadcast %cst_5 : f32 to vector<16x1xf32>
    %13 = arith.divf %11, %12 : vector<16x1xf32>
    %cst_6 = arith.constant 9.99999997E-7 : f32
    %14 = vector.broadcast %cst_6 : f32 to vector<16x1xf32>
    %15 = arith.addf %13, %14 : vector<16x1xf32>
    %16 = math.rsqrt %15 : vector<16x1xf32>
    %17 = vector.broadcast %16 : vector<16x1xf32> to vector<16x32xf32>
    %18 = arith.mulf %8, %17 : vector<16x32xf32>
    %c0_7 = arith.constant 0 : index
    %c0_8 = arith.constant 0 : index
    %19 = vector.load %arg3[%c0_7, %c0_8] : memref<1x32xf32, #tpu.memory_space<vmem>>, vector<1x32xf32>
    %20 = vector.broadcast %19 : vector<1x32xf32> to vector<16x32xf32>
    %21 = arith.mulf %18, %20 : vector<16x32xf32>
    %c0_9 = arith.constant 0 : index
    %c0_10 = arith.constant 0 : index
    %22 = vector.load %arg4[%c0_9, %c0_10] : memref<1x32xf32, #tpu.memory_space<vmem>>, vector<1x32xf32>
    %23 = vector.broadcast %22 : vector<1x32xf32> to vector<16x32xf32>
    %24 = arith.addf %21, %23 : vector<16x32xf32>
    %c0_11 = arith.constant 0 : index
    %c0_12 = arith.constant 0 : index
    %25 = vector.load %arg5[%c0_11, %c0_12] : memref<16x32xf32, #tpu.memory_space<vmem>>, vector<16x32xf32>
    tpu.vector_store %arg5[%c0_11, %c0_12], %24 {strides = array<i32>} : memref<16x32xf32, #tpu.memory_space<vmem>>, vector<16x32xf32>,
    return
  }
  func.func @transform_0(%arg0: i32) -> (i32, i32) {
    %c0_i32 = arith.constant 0 : i32
    %c0_i32_0 = arith.constant 0 : i32
    return %arg0, %c0_i32 : i32, i32
  }
  func.func @transform_1(%arg0: i32) -> (i32, i32) {
    %c0_i32 = arith.constant 0 : i32
    %c0_i32_0 = arith.constant 0 : i32
    return %arg0, %c0_i32 : i32, i32
  }
  func.func @transform_2(%arg0: i32) -> (i32, i32) {
    %c0_i32 = arith.constant 0 : i32
    %c0_i32_0 = arith.constant 0 : i32
    %c0_i32_1 = arith.constant 0 : i32
    return %c0_i32, %c0_i32_0 : i32, i32
  }
  func.func @transform_3(%arg0: i32) -> (i32, i32) {
    %c0_i32 = arith.constant 0 : i32
    %c0_i32_0 = arith.constant 0 : i32
    %c0_i32_1 = arith.constant 0 : i32
    return %c0_i32, %c0_i32_0 : i32, i32
  }
  func.func @transform_4(%arg0: i32) -> (i32, i32) {
    %c0_i32 = arith.constant 0 : i32
    %c0_i32_0 = arith.constant 0 : i32
    return %arg0, %c0_i32 : i32, i32
  }
}

module attributes {stable_mosaic.version = 11 : i64} {
  func.func @_attention_kernel(%arg0: i32, %arg1: memref<1x8x32xf32, #tpu.memory_space<vmem>>, %arg2: memref<1x8x32xf32, #tpu.memory_space<vmem>>, %arg3: memref<1x8x32xf32, #tpu.memory_space<vmem>>, %arg4: memref<1x8x8xf32, #tpu.memory_space<vmem>>, %arg5: memref<1x8x32xf32, #tpu.memory_space<vmem>>) attributes {dimension_semantics = [#tpu.dimension_semantics<parallel>], iteration_bounds = array<i64: 2>, scalar_prefetch = 0 : i64, scratch_operands = 0 : i64, tpu.core_type = #tpu.core_type<tc>, window_params = [{transform_indices = @transform_0, window_bounds = array<i64: 1, 8, 32>}, {transform_indices = @transform_1, window_bounds = array<i64: 1, 8, 32>}, {transform_indices = @transform_2, window_bounds = array<i64: 1, 8, 32>}, {transform_indices = @transform_3, window_bounds = array<i64: 1, 8, 8>}, {transform_indices = @transform_4, window_bounds = array<i64: 1, 8, 32>}]} {
    %c0 = arith.constant 0 : index
    %c0_0 = arith.constant 0 : index
    %c0_1 = arith.constant 0 : index
    %0 = vector.load %arg1[%c0, %c0_0, %c0_1] : memref<1x8x32xf32, #tpu.memory_space<vmem>>, vector<1x8x32xf32>
    %1 = vector.shape_cast %0 : vector<1x8x32xf32> to vector<8x32xf32>
    %c0_2 = arith.constant 0 : index
    %c0_3 = arith.constant 0 : index
    %c0_4 = arith.constant 0 : index
    %2 = vector.load %arg2[%c0_2, %c0_3, %c0_4] : memref<1x8x32xf32, #tpu.memory_space<vmem>>, vector<1x8x32xf32>
    %3 = vector.shape_cast %2 : vector<1x8x32xf32> to vector<8x32xf32>
    %c0_5 = arith.constant 0 : index
    %c0_6 = arith.constant 0 : index
    %c0_7 = arith.constant 0 : index
    %4 = vector.load %arg3[%c0_5, %c0_6, %c0_7] : memref<1x8x32xf32, #tpu.memory_space<vmem>>, vector<1x8x32xf32>
    %5 = vector.shape_cast %4 : vector<1x8x32xf32> to vector<8x32xf32>
    %c0_8 = arith.constant 0 : index
    %c0_9 = arith.constant 0 : index
    %c0_10 = arith.constant 0 : index
    %6 = vector.load %arg4[%c0_8, %c0_9, %c0_10] : memref<1x8x8xf32, #tpu.memory_space<vmem>>, vector<1x8x8xf32>
    %7 = vector.shape_cast %6 : vector<1x8x8xf32> to vector<8x8xf32>
    %8 = vector.extract_strided_slice %1 {offsets = [0, 0], sizes = [8, 8], strides = [1, 1]} : vector<8x32xf32> to vector<8x8xf32>
    %9 = arith.truncf %8 : vector<8x8xf32> to vector<8x8xbf16>
    %10 = vector.extract_strided_slice %3 {offsets = [0, 0], sizes = [8, 8], strides = [1, 1]} : vector<8x32xf32> to vector<8x8xf32>
    %11 = arith.truncf %10 : vector<8x8xf32> to vector<8x8xbf16>
    %12 = vector.extract_strided_slice %5 {offsets = [0, 0], sizes = [8, 8], strides = [1, 1]} : vector<8x32xf32> to vector<8x8xf32>
    %13 = arith.truncf %12 : vector<8x8xf32> to vector<8x8xbf16>
    %14 = tpu.transpose %11, [1, 0] : vector<8x8xbf16> -> vector<8x8xbf16>
    %cst = arith.constant dense<0.000000e+00> : vector<8x8xf32>
    %15 = tpu.matmul %9, %14, %cst {dimension_numbers = #tpu.dot_dimension_numbers<[1], [0], [0], [1], [0, 0, 1, 1], [], []>} : vector<8x8xbf16>, vector<8x8xbf16>, vector<8x8xf32> -> vector<8x8xf32>
    %cst_11 = arith.constant 0.353553385 : f32
    %16 = vector.broadcast %cst_11 : f32 to vector<8x8xf32>
    %17 = arith.mulf %15, %16 : vector<8x8xf32>
    %18 = arith.addf %17, %7 : vector<8x8xf32>
    %cst_12 = arith.constant dense<0xFF800000> : vector<8xf32>
    %19 = vector.multi_reduction <maximumf>, %18, %cst_12 [1] : vector<8x8xf32> to vector<8xf32>
    %20 = vector.shape_cast %19 : vector<8xf32> to vector<8x1xf32>
    %21 = vector.broadcast %20 : vector<8x1xf32> to vector<8x8xf32>
    %22 = arith.subf %18, %21 : vector<8x8xf32>
    %23 = math.exp %22 : vector<8x8xf32>
    %cst_13 = arith.constant dense<0.000000e+00> : vector<8xf32>
    %24 = vector.multi_reduction <add>, %23, %cst_13 [1] : vector<8x8xf32> to vector<8xf32>
    %25 = vector.shape_cast %24 : vector<8xf32> to vector<8x1xf32>
    %26 = tpu.reciprocal %25 {approx = true} : vector<8x1xf32> -> vector<8x1xf32>
    %27 = vector.broadcast %26 : vector<8x1xf32> to vector<8x8xf32>
    %28 = arith.mulf %23, %27 : vector<8x8xf32>
    %29 = arith.truncf %28 : vector<8x8xf32> to vector<8x8xbf16>
    %cst_14 = arith.constant dense<0.000000e+00> : vector<8x8xf32>
    %30 = tpu.matmul %29, %13, %cst_14 {dimension_numbers = #tpu.dot_dimension_numbers<[1], [0], [0], [1], [0, 0, 1, 1], [], []>} : vector<8x8xbf16>, vector<8x8xbf16>, vector<8x8xf32> -> vector<8x8xf32>
    %31 = vector.extract_strided_slice %1 {offsets = [0, 8], sizes = [8, 8], strides = [1, 1]} : vector<8x32xf32> to vector<8x8xf32>
    %32 = arith.truncf %31 : vector<8x8xf32> to vector<8x8xbf16>
    %33 = vector.extract_strided_slice %3 {offsets = [0, 8], sizes = [8, 8], strides = [1, 1]} : vector<8x32xf32> to vector<8x8xf32>
    %34 = arith.truncf %33 : vector<8x8xf32> to vector<8x8xbf16>
    %35 = vector.extract_strided_slice %5 {offsets = [0, 8], sizes = [8, 8], strides = [1, 1]} : vector<8x32xf32> to vector<8x8xf32>
    %36 = arith.truncf %35 : vector<8x8xf32> to vector<8x8xbf16>
    %37 = tpu.transpose %34, [1, 0] : vector<8x8xbf16> -> vector<8x8xbf16>
    %cst_15 = arith.constant dense<0.000000e+00> : vector<8x8xf32>
    %38 = tpu.matmul %32, %37, %cst_15 {dimension_numbers = #tpu.dot_dimension_numbers<[1], [0], [0], [1], [0, 0, 1, 1], [], []>} : vector<8x8xbf16>, vector<8x8xbf16>, vector<8x8xf32> -> vector<8x8xf32>
    %cst_16 = arith.constant 0.353553385 : f32
    %39 = vector.broadcast %cst_16 : f32 to vector<8x8xf32>
    %40 = arith.mulf %38, %39 : vector<8x8xf32>
    %41 = arith.addf %40, %7 : vector<8x8xf32>
    %cst_17 = arith.constant dense<0xFF800000> : vector<8xf32>
    %42 = vector.multi_reduction <maximumf>, %41, %cst_17 [1] : vector<8x8xf32> to vector<8xf32>
    %43 = vector.shape_cast %42 : vector<8xf32> to vector<8x1xf32>
    %44 = vector.broadcast %43 : vector<8x1xf32> to vector<8x8xf32>
    %45 = arith.subf %41, %44 : vector<8x8xf32>
    %46 = math.exp %45 : vector<8x8xf32>
    %cst_18 = arith.constant dense<0.000000e+00> : vector<8xf32>
    %47 = vector.multi_reduction <add>, %46, %cst_18 [1] : vector<8x8xf32> to vector<8xf32>
    %48 = vector.shape_cast %47 : vector<8xf32> to vector<8x1xf32>
    %49 = tpu.reciprocal %48 {approx = true} : vector<8x1xf32> -> vector<8x1xf32>
    %50 = vector.broadcast %49 : vector<8x1xf32> to vector<8x8xf32>
    %51 = arith.mulf %46, %50 : vector<8x8xf32>
    %52 = arith.truncf %51 : vector<8x8xf32> to vector<8x8xbf16>
    %cst_19 = arith.constant dense<0.000000e+00> : vector<8x8xf32>
    %53 = tpu.matmul %52, %36, %cst_19 {dimension_numbers = #tpu.dot_dimension_numbers<[1], [0], [0], [1], [0, 0, 1, 1], [], []>} : vector<8x8xbf16>, vector<8x8xbf16>, vector<8x8xf32> -> vector<8x8xf32>
    %54 = vector.extract_strided_slice %1 {offsets = [0, 16], sizes = [8, 8], strides = [1, 1]} : vector<8x32xf32> to vector<8x8xf32>
    %55 = arith.truncf %54 : vector<8x8xf32> to vector<8x8xbf16>
    %56 = vector.extract_strided_slice %3 {offsets = [0, 16], sizes = [8, 8], strides = [1, 1]} : vector<8x32xf32> to vector<8x8xf32>
    %57 = arith.truncf %56 : vector<8x8xf32> to vector<8x8xbf16>
    %58 = vector.extract_strided_slice %5 {offsets = [0, 16], sizes = [8, 8], strides = [1, 1]} : vector<8x32xf32> to vector<8x8xf32>
    %59 = arith.truncf %58 : vector<8x8xf32> to vector<8x8xbf16>
    %60 = tpu.transpose %57, [1, 0] : vector<8x8xbf16> -> vector<8x8xbf16>
    %cst_20 = arith.constant dense<0.000000e+00> : vector<8x8xf32>
    %61 = tpu.matmul %55, %60, %cst_20 {dimension_numbers = #tpu.dot_dimension_numbers<[1], [0], [0], [1], [0, 0, 1, 1], [], []>} : vector<8x8xbf16>, vector<8x8xbf16>, vector<8x8xf32> -> vector<8x8xf32>
    %cst_21 = arith.constant 0.353553385 : f32
    %62 = vector.broadcast %cst_21 : f32 to vector<8x8xf32>
    %63 = arith.mulf %61, %62 : vector<8x8xf32>
    %64 = arith.addf %63, %7 : vector<8x8xf32>
    %cst_22 = arith.constant dense<0xFF800000> : vector<8xf32>
    %65 = vector.multi_reduction <maximumf>, %64, %cst_22 [1] : vector<8x8xf32> to vector<8xf32>
    %66 = vector.shape_cast %65 : vector<8xf32> to vector<8x1xf32>
    %67 = vector.broadcast %66 : vector<8x1xf32> to vector<8x8xf32>
    %68 = arith.subf %64, %67 : vector<8x8xf32>
    %69 = math.exp %68 : vector<8x8xf32>
    %cst_23 = arith.constant dense<0.000000e+00> : vector<8xf32>
    %70 = vector.multi_reduction <add>, %69, %cst_23 [1] : vector<8x8xf32> to vector<8xf32>
    %71 = vector.shape_cast %70 : vector<8xf32> to vector<8x1xf32>
    %72 = tpu.reciprocal %71 {approx = true} : vector<8x1xf32> -> vector<8x1xf32>
    %73 = vector.broadcast %72 : vector<8x1xf32> to vector<8x8xf32>
    %74 = arith.mulf %69, %73 : vector<8x8xf32>
    %75 = arith.truncf %74 : vector<8x8xf32> to vector<8x8xbf16>
    %cst_24 = arith.constant dense<0.000000e+00> : vector<8x8xf32>
    %76 = tpu.matmul %75, %59, %cst_24 {dimension_numbers = #tpu.dot_dimension_numbers<[1], [0], [0], [1], [0, 0, 1, 1], [], []>} : vector<8x8xbf16>, vector<8x8xbf16>, vector<8x8xf32> -> vector<8x8xf32>
    %77 = vector.extract_strided_slice %1 {offsets = [0, 24], sizes = [8, 8], strides = [1, 1]} : vector<8x32xf32> to vector<8x8xf32>
    %78 = arith.truncf %77 : vector<8x8xf32> to vector<8x8xbf16>
    %79 = vector.extract_strided_slice %3 {offsets = [0, 24], sizes = [8, 8], strides = [1, 1]} : vector<8x32xf32> to vector<8x8xf32>
    %80 = arith.truncf %79 : vector<8x8xf32> to vector<8x8xbf16>
    %81 = vector.extract_strided_slice %5 {offsets = [0, 24], sizes = [8, 8], strides = [1, 1]} : vector<8x32xf32> to vector<8x8xf32>
    %82 = arith.truncf %81 : vector<8x8xf32> to vector<8x8xbf16>
    %83 = tpu.transpose %80, [1, 0] : vector<8x8xbf16> -> vector<8x8xbf16>
    %cst_25 = arith.constant dense<0.000000e+00> : vector<8x8xf32>
    %84 = tpu.matmul %78, %83, %cst_25 {dimension_numbers = #tpu.dot_dimension_numbers<[1], [0], [0], [1], [0, 0, 1, 1], [], []>} : vector<8x8xbf16>, vector<8x8xbf16>, vector<8x8xf32> -> vector<8x8xf32>
    %cst_26 = arith.constant 0.353553385 : f32
    %85 = vector.broadcast %cst_26 : f32 to vector<8x8xf32>
    %86 = arith.mulf %84, %85 : vector<8x8xf32>
    %87 = arith.addf %86, %7 : vector<8x8xf32>
    %cst_27 = arith.constant dense<0xFF800000> : vector<8xf32>
    %88 = vector.multi_reduction <maximumf>, %87, %cst_27 [1] : vector<8x8xf32> to vector<8xf32>
    %89 = vector.shape_cast %88 : vector<8xf32> to vector<8x1xf32>
    %90 = vector.broadcast %89 : vector<8x1xf32> to vector<8x8xf32>
    %91 = arith.subf %87, %90 : vector<8x8xf32>
    %92 = math.exp %91 : vector<8x8xf32>
    %cst_28 = arith.constant dense<0.000000e+00> : vector<8xf32>
    %93 = vector.multi_reduction <add>, %92, %cst_28 [1] : vector<8x8xf32> to vector<8xf32>
    %94 = vector.shape_cast %93 : vector<8xf32> to vector<8x1xf32>
    %95 = tpu.reciprocal %94 {approx = true} : vector<8x1xf32> -> vector<8x1xf32>
    %96 = vector.broadcast %95 : vector<8x1xf32> to vector<8x8xf32>
    %97 = arith.mulf %92, %96 : vector<8x8xf32>
    %98 = arith.truncf %97 : vector<8x8xf32> to vector<8x8xbf16>
    %cst_29 = arith.constant dense<0.000000e+00> : vector<8x8xf32>
    %99 = tpu.matmul %98, %82, %cst_29 {dimension_numbers = #tpu.dot_dimension_numbers<[1], [0], [0], [1], [0, 0, 1, 1], [], []>} : vector<8x8xbf16>, vector<8x8xbf16>, vector<8x8xf32> -> vector<8x8xf32>
    %100 = tpu.concatenate %30, %53, %76, %99 in 1 : vector<8x8xf32>, vector<8x8xf32>, vector<8x8xf32>, vector<8x8xf32> -> vector<8x32xf32>
    %c0_30 = arith.constant 0 : index
    %c0_31 = arith.constant 0 : index
    %c0_32 = arith.constant 0 : index
    %101 = vector.load %arg5[%c0_30, %c0_31, %c0_32] : memref<1x8x32xf32, #tpu.memory_space<vmem>>, vector<1x8x32xf32>
    %102 = vector.shape_cast %101 : vector<1x8x32xf32> to vector<8x32xf32>
    %103 = vector.shape_cast %100 : vector<8x32xf32> to vector<1x8x32xf32>
    tpu.vector_store %arg5[%c0_30, %c0_31, %c0_32], %103 {strides = array<i32>} : memref<1x8x32xf32, #tpu.memory_space<vmem>>, vector<1x8x32xf32>,
    return
  }
  func.func @transform_0(%arg0: i32) -> (i32, i32, i32) {
    %c0_i32 = arith.constant 0 : i32
    %c0_i32_0 = arith.constant 0 : i32
    %c0_i32_1 = arith.constant 0 : i32
    return %arg0, %c0_i32, %c0_i32_0 : i32, i32, i32
  }
  func.func @transform_1(%arg0: i32) -> (i32, i32, i32) {
    %c0_i32 = arith.constant 0 : i32
    %c0_i32_0 = arith.constant 0 : i32
    %c0_i32_1 = arith.constant 0 : i32
    return %arg0, %c0_i32, %c0_i32_0 : i32, i32, i32
  }
  func.func @transform_2(%arg0: i32) -> (i32, i32, i32) {
    %c0_i32 = arith.constant 0 : i32
    %c0_i32_0 = arith.constant 0 : i32
    %c0_i32_1 = arith.constant 0 : i32
    return %arg0, %c0_i32, %c0_i32_0 : i32, i32, i32
  }
  func.func @transform_3(%arg0: i32) -> (i32, i32, i32) {
    %c0_i32 = arith.constant 0 : i32
    %c0_i32_0 = arith.constant 0 : i32
    %c0_i32_1 = arith.constant 0 : i32
    return %arg0, %c0_i32, %c0_i32_0 : i32, i32, i32
  }
  func.func @transform_4(%arg0: i32) -> (i32, i32, i32) {
    %c0_i32 = arith.constant 0 : i32
    %c0_i32_0 = arith.constant 0 : i32
    %c0_i32_1 = arith.constant 0 : i32
    return %arg0, %c0_i32, %c0_i32_0 : i32, i32, i32
  }
}

module attributes {stable_mosaic.version = 11 : i64} {
  func.func @_linear_kernel(%arg0: i32, %arg1: i32, %arg2: i32, %arg3: memref<16x32xf32, #tpu.memory_space<vmem>>, %arg4: memref<32x96xbf16, #tpu.memory_space<vmem>>, %arg5: memref<16x96xf32, #tpu.memory_space<vmem>>, %arg6: memref<16x96xf32, #tpu.memory_space<vmem>>) attributes {dimension_semantics = [#tpu.dimension_semantics<parallel>, #tpu.dimension_semantics<parallel>, #tpu.dimension_semantics<arbitrary>], iteration_bounds = array<i64: 1, 1, 1>, scalar_prefetch = 0 : i64, scratch_operands = 1 : i64, tpu.core_type = #tpu.core_type<tc>, window_params = [{transform_indices = @transform_0, window_bounds = array<i64: 16, 32>}, {transform_indices = @transform_1, window_bounds = array<i64: 32, 96>}, {transform_indices = @transform_2, window_bounds = array<i64: 16, 96>}]} {
    %c0_i32 = arith.constant 0 : i32
    %0 = arith.cmpi eq, %arg2, %c0_i32 : i32
    %1 = arith.extui %0 : i1 to i32
    %c0_i32_0 = arith.constant 0 : i32
    %2 = arith.cmpi ne, %1, %c0_i32_0 : i32
    scf.if %2 {
      %cst_10 = arith.constant 0.000000e+00 : f32
      %13 = vector.broadcast %cst_10 : f32 to vector<16x96xf32>
      %c0_11 = arith.constant 0 : index
      %c0_12 = arith.constant 0 : index
      %14 = vector.load %arg6[%c0_11, %c0_12] : memref<16x96xf32, #tpu.memory_space<vmem>>, vector<16x96xf32>
      tpu.vector_store %arg6[%c0_11, %c0_12], %13 {strides = array<i32>} : memref<16x96xf32, #tpu.memory_space<vmem>>, vector<16x96xf32>,
    } else {
    }
    %c0 = arith.constant 0 : index
    %c0_1 = arith.constant 0 : index
    %3 = vector.load %arg6[%c0, %c0_1] : memref<16x96xf32, #tpu.memory_space<vmem>>, vector<16x96xf32>
    %c0_2 = arith.constant 0 : index
    %c0_3 = arith.constant 0 : index
    %4 = vector.load %arg3[%c0_2, %c0_3] : memref<16x32xf32, #tpu.memory_space<vmem>>, vector<16x32xf32>
    %5 = arith.truncf %4 : vector<16x32xf32> to vector<16x32xbf16>
    %c0_4 = arith.constant 0 : index
    %c0_5 = arith.constant 0 : index
    %6 = vector.load %arg4[%c0_4, %c0_5] : memref<32x96xbf16, #tpu.memory_space<vmem>>, vector<32x96xbf16>
    %cst = arith.constant dense<0.000000e+00> : vector<16x96xf32>
    %7 = tpu.matmul %5, %6, %cst {dimension_numbers = #tpu.dot_dimension_numbers<[1], [0], [0], [1], [0, 0, 1, 1], [], []>} : vector<16x32xbf16>, vector<32x96xbf16>, vector<16x96xf32> -> vector<16x96xf32>
    %8 = arith.addf %3, %7 : vector<16x96xf32>
    %c0_6 = arith.constant 0 : index
    %c0_7 = arith.constant 0 : index
    %9 = vector.load %arg6[%c0_6, %c0_7] : memref<16x96xf32, #tpu.memory_space<vmem>>, vector<16x96xf32>
    tpu.vector_store %arg6[%c0_6, %c0_7], %8 {strides = array<i32>} : memref<16x96xf32, #tpu.memory_space<vmem>>, vector<16x96xf32>,
    %c0_i32_8 = arith.constant 0 : i32
    %10 = arith.cmpi eq, %arg2, %c0_i32_8 : i32
    %11 = arith.extui %10 : i1 to i32
    %c0_i32_9 = arith.constant 0 : i32
    %12 = arith.cmpi ne, %11, %c0_i32_9 : i32
    scf.if %12 {
      %c0_10 = arith.constant 0 : index
      %c0_11 = arith.constant 0 : index
      %13 = vector.load %arg6[%c0_10, %c0_11] : memref<16x96xf32, #tpu.memory_space<vmem>>, vector<16x96xf32>
      %c0_12 = arith.constant 0 : index
      %c0_13 = arith.constant 0 : index
      %14 = vector.load %arg5[%c0_12, %c0_13] : memref<16x96xf32, #tpu.memory_space<vmem>>, vector<16x96xf32>
      tpu.vector_store %arg5[%c0_12, %c0_13], %13 {strides = array<i32>} : memref<16x96xf32, #tpu.memory_space<vmem>>, vector<16x96xf32>,
    } else {
    }
    return
  }
  func.func @transform_0(%arg0: i32, %arg1: i32, %arg2: i32) -> (i32, i32) {
    %c0_i32 = arith.constant 0 : i32
    return %arg0, %arg2 : i32, i32
  }
  func.func @transform_1(%arg0: i32, %arg1: i32, %arg2: i32) -> (i32, i32) {
    %c0_i32 = arith.constant 0 : i32
    return %arg2, %arg1 : i32, i32
  }
  func.func @transform_2(%arg0: i32, %arg1: i32, %arg2: i32) -> (i32, i32) {
    %c0_i32 = arith.constant 0 : i32
    return %arg0, %arg1 : i32, i32
  }
}

module attributes {stable_mosaic.version = 11 : i64} {
  func.func @_linear_bias_kernel(%arg0: i32, %arg1: i32, %arg2: i32, %arg3: memref<16x32xf32, #tpu.memory_space<vmem>>, %arg4: memref<32x64xbf16, #tpu.memory_space<vmem>>, %arg5: memref<1x64xf32, #tpu.memory_space<vmem>>, %arg6: memref<16x64xf32, #tpu.memory_space<vmem>>, %arg7: memref<16x64xf32, #tpu.memory_space<vmem>>) attributes {dimension_semantics = [#tpu.dimension_semantics<parallel>, #tpu.dimension_semantics<parallel>, #tpu.dimension_semantics<arbitrary>], iteration_bounds = array<i64: 1, 1, 1>, scalar_prefetch = 0 : i64, scratch_operands = 1 : i64, tpu.core_type = #tpu.core_type<tc>, window_params = [{transform_indices = @transform_0, window_bounds = array<i64: 16, 32>}, {transform_indices = @transform_1, window_bounds = array<i64: 32, 64>}, {transform_indices = @transform_2, window_bounds = array<i64: 1, 64>}, {transform_indices = @transform_3, window_bounds = array<i64: 16, 64>}]} {
    %c0_i32 = arith.constant 0 : i32
    %0 = arith.cmpi eq, %arg2, %c0_i32 : i32
    %1 = arith.extui %0 : i1 to i32
    %c0_i32_0 = arith.constant 0 : i32
    %2 = arith.cmpi ne, %1, %c0_i32_0 : i32
    scf.if %2 {
      %cst_10 = arith.constant 0.000000e+00 : f32
      %13 = vector.broadcast %cst_10 : f32 to vector<16x64xf32>
      %c0_11 = arith.constant 0 : index
      %c0_12 = arith.constant 0 : index
      %14 = vector.load %arg7[%c0_11, %c0_12] : memref<16x64xf32, #tpu.memory_space<vmem>>, vector<16x64xf32>
      tpu.vector_store %arg7[%c0_11, %c0_12], %13 {strides = array<i32>} : memref<16x64xf32, #tpu.memory_space<vmem>>, vector<16x64xf32>,
    } else {
    }
    %c0 = arith.constant 0 : index
    %c0_1 = arith.constant 0 : index
    %3 = vector.load %arg7[%c0, %c0_1] : memref<16x64xf32, #tpu.memory_space<vmem>>, vector<16x64xf32>
    %c0_2 = arith.constant 0 : index
    %c0_3 = arith.constant 0 : index
    %4 = vector.load %arg3[%c0_2, %c0_3] : memref<16x32xf32, #tpu.memory_space<vmem>>, vector<16x32xf32>
    %5 = arith.truncf %4 : vector<16x32xf32> to vector<16x32xbf16>
    %c0_4 = arith.constant 0 : index
    %c0_5 = arith.constant 0 : index
    %6 = vector.load %arg4[%c0_4, %c0_5] : memref<32x64xbf16, #tpu.memory_space<vmem>>, vector<32x64xbf16>
    %cst = arith.constant dense<0.000000e+00> : vector<16x64xf32>
    %7 = tpu.matmul %5, %6, %cst {dimension_numbers = #tpu.dot_dimension_numbers<[1], [0], [0], [1], [0, 0, 1, 1], [], []>} : vector<16x32xbf16>, vector<32x64xbf16>, vector<16x64xf32> -> vector<16x64xf32>
    %8 = arith.addf %3, %7 : vector<16x64xf32>
    %c0_6 = arith.constant 0 : index
    %c0_7 = arith.constant 0 : index
    %9 = vector.load %arg7[%c0_6, %c0_7] : memref<16x64xf32, #tpu.memory_space<vmem>>, vector<16x64xf32>
    tpu.vector_store %arg7[%c0_6, %c0_7], %8 {strides = array<i32>} : memref<16x64xf32, #tpu.memory_space<vmem>>, vector<16x64xf32>,
    %c0_i32_8 = arith.constant 0 : i32
    %10 = arith.cmpi eq, %arg2, %c0_i32_8 : i32
    %11 = arith.extui %10 : i1 to i32
    %c0_i32_9 = arith.constant 0 : i32
    %12 = arith.cmpi ne, %11, %c0_i32_9 : i32
    scf.if %12 {
      %c0_10 = arith.constant 0 : index
      %c0_11 = arith.constant 0 : index
      %13 = vector.load %arg7[%c0_10, %c0_11] : memref<16x64xf32, #tpu.memory_space<vmem>>, vector<16x64xf32>
      %c0_12 = arith.constant 0 : index
      %c0_13 = arith.constant 0 : index
      %14 = vector.load %arg5[%c0_12, %c0_13] : memref<1x64xf32, #tpu.memory_space<vmem>>, vector<1x64xf32>
      %15 = vector.broadcast %14 : vector<1x64xf32> to vector<16x64xf32>
      %16 = arith.addf %13, %15 : vector<16x64xf32>
      %cst_14 = arith.constant 0.000000e+00 : f32
      %17 = vector.broadcast %cst_14 : f32 to vector<16x64xf32>
      %18 = arith.maximumf %16, %17 : vector<16x64xf32>
      %c0_15 = arith.constant 0 : index
      %c0_16 = arith.constant 0 : index
      %19 = vector.load %arg6[%c0_15, %c0_16] : memref<16x64xf32, #tpu.memory_space<vmem>>, vector<16x64xf32>
      tpu.vector_store %arg6[%c0_15, %c0_16], %18 {strides = array<i32>} : memref<16x64xf32, #tpu.memory_space<vmem>>, vector<16x64xf32>,
    } else {
    }
    return
  }
  func.func @transform_0(%arg0: i32, %arg1: i32, %arg2: i32) -> (i32, i32) {
    %c0_i32 = arith.constant 0 : i32
    return %arg0, %arg2 : i32, i32
  }
  func.func @transform_1(%arg0: i32, %arg1: i32, %arg2: i32) -> (i32, i32) {
    %c0_i32 = arith.constant 0 : i32
    return %arg2, %arg1 : i32, i32
  }
  func.func @transform_2(%arg0: i32, %arg1: i32, %arg2: i32) -> (i32, i32) {
    %c0_i32 = arith.constant 0 : i32
    %c0_i32_0 = arith.constant 0 : i32
    return %c0_i32, %arg1 : i32, i32
  }
  func.func @transform_3(%arg0: i32, %arg1: i32, %arg2: i32) -> (i32, i32) {
    %c0_i32 = arith.constant 0 : i32
    return %arg0, %arg1 : i32, i32
  }
}

module attributes {stable_mosaic.version = 11 : i64} {
  func.func @_linear_kernel(%arg0: i32, %arg1: i32, %arg2: i32, %arg3: memref<16x32xf32, #tpu.memory_space<vmem>>, %arg4: memref<32x64xbf16, #tpu.memory_space<vmem>>, %arg5: memref<16x64xf32, #tpu.memory_space<vmem>>, %arg6: memref<16x64xf32, #tpu.memory_space<vmem>>) attributes {dimension_semantics = [#tpu.dimension_semantics<parallel>, #tpu.dimension_semantics<parallel>, #tpu.dimension_semantics<arbitrary>], iteration_bounds = array<i64: 1, 1, 1>, scalar_prefetch = 0 : i64, scratch_operands = 1 : i64, tpu.core_type = #tpu.core_type<tc>, window_params = [{transform_indices = @transform_0, window_bounds = array<i64: 16, 32>}, {transform_indices = @transform_1, window_bounds = array<i64: 32, 64>}, {transform_indices = @transform_2, window_bounds = array<i64: 16, 64>}]} {
    %c0_i32 = arith.constant 0 : i32
    %0 = arith.cmpi eq, %arg2, %c0_i32 : i32
    %1 = arith.extui %0 : i1 to i32
    %c0_i32_0 = arith.constant 0 : i32
    %2 = arith.cmpi ne, %1, %c0_i32_0 : i32
    scf.if %2 {
      %cst_10 = arith.constant 0.000000e+00 : f32
      %13 = vector.broadcast %cst_10 : f32 to vector<16x64xf32>
      %c0_11 = arith.constant 0 : index
      %c0_12 = arith.constant 0 : index
      %14 = vector.load %arg6[%c0_11, %c0_12] : memref<16x64xf32, #tpu.memory_space<vmem>>, vector<16x64xf32>
      tpu.vector_store %arg6[%c0_11, %c0_12], %13 {strides = array<i32>} : memref<16x64xf32, #tpu.memory_space<vmem>>, vector<16x64xf32>,
    } else {
    }
    %c0 = arith.constant 0 : index
    %c0_1 = arith.constant 0 : index
    %3 = vector.load %arg6[%c0, %c0_1] : memref<16x64xf32, #tpu.memory_space<vmem>>, vector<16x64xf32>
    %c0_2 = arith.constant 0 : index
    %c0_3 = arith.constant 0 : index
    %4 = vector.load %arg3[%c0_2, %c0_3] : memref<16x32xf32, #tpu.memory_space<vmem>>, vector<16x32xf32>
    %5 = arith.truncf %4 : vector<16x32xf32> to vector<16x32xbf16>
    %c0_4 = arith.constant 0 : index
    %c0_5 = arith.constant 0 : index
    %6 = vector.load %arg4[%c0_4, %c0_5] : memref<32x64xbf16, #tpu.memory_space<vmem>>, vector<32x64xbf16>
    %cst = arith.constant dense<0.000000e+00> : vector<16x64xf32>
    %7 = tpu.matmul %5, %6, %cst {dimension_numbers = #tpu.dot_dimension_numbers<[1], [0], [0], [1], [0, 0, 1, 1], [], []>} : vector<16x32xbf16>, vector<32x64xbf16>, vector<16x64xf32> -> vector<16x64xf32>
    %8 = arith.addf %3, %7 : vector<16x64xf32>
    %c0_6 = arith.constant 0 : index
    %c0_7 = arith.constant 0 : index
    %9 = vector.load %arg6[%c0_6, %c0_7] : memref<16x64xf32, #tpu.memory_space<vmem>>, vector<16x64xf32>
    tpu.vector_store %arg6[%c0_6, %c0_7], %8 {strides = array<i32>} : memref<16x64xf32, #tpu.memory_space<vmem>>, vector<16x64xf32>,
    %c0_i32_8 = arith.constant 0 : i32
    %10 = arith.cmpi eq, %arg2, %c0_i32_8 : i32
    %11 = arith.extui %10 : i1 to i32
    %c0_i32_9 = arith.constant 0 : i32
    %12 = arith.cmpi ne, %11, %c0_i32_9 : i32
    scf.if %12 {
      %c0_10 = arith.constant 0 : index
      %c0_11 = arith.constant 0 : index
      %13 = vector.load %arg6[%c0_10, %c0_11] : memref<16x64xf32, #tpu.memory_space<vmem>>, vector<16x64xf32>
      %c0_12 = arith.constant 0 : index
      %c0_13 = arith.constant 0 : index
      %14 = vector.load %arg5[%c0_12, %c0_13] : memref<16x64xf32, #tpu.memory_space<vmem>>, vector<16x64xf32>
      tpu.vector_store %arg5[%c0_12, %c0_13], %13 {strides = array<i32>} : memref<16x64xf32, #tpu.memory_space<vmem>>, vector<16x64xf32>,
    } else {
    }
    return
  }
  func.func @transform_0(%arg0: i32, %arg1: i32, %arg2: i32) -> (i32, i32) {
    %c0_i32 = arith.constant 0 : i32
    return %arg0, %arg2 : i32, i32
  }
  func.func @transform_1(%arg0: i32, %arg1: i32, %arg2: i32) -> (i32, i32) {
    %c0_i32 = arith.constant 0 : i32
    return %arg2, %arg1 : i32, i32
  }
  func.func @transform_2(%arg0: i32, %arg1: i32, %arg2: i32) -> (i32, i32) {
    %c0_i32 = arith.constant 0 : i32
    return %arg0, %arg1 : i32, i32
  }
}

module attributes {stable_mosaic.version = 11 : i64} {
  func.func @_linear_bias_kernel(%arg0: i32, %arg1: i32, %arg2: i32, %arg3: memref<16x64xf32, #tpu.memory_space<vmem>>, %arg4: memref<64x32xbf16, #tpu.memory_space<vmem>>, %arg5: memref<1x32xf32, #tpu.memory_space<vmem>>, %arg6: memref<16x32xf32, #tpu.memory_space<vmem>>, %arg7: memref<16x32xf32, #tpu.memory_space<vmem>>) attributes {dimension_semantics = [#tpu.dimension_semantics<parallel>, #tpu.dimension_semantics<parallel>, #tpu.dimension_semantics<arbitrary>], iteration_bounds = array<i64: 1, 1, 1>, scalar_prefetch = 0 : i64, scratch_operands = 1 : i64, tpu.core_type = #tpu.core_type<tc>, window_params = [{transform_indices = @transform_0, window_bounds = array<i64: 16, 64>}, {transform_indices = @transform_1, window_bounds = array<i64: 64, 32>}, {transform_indices = @transform_2, window_bounds = array<i64: 1, 32>}, {transform_indices = @transform_3, window_bounds = array<i64: 16, 32>}]} {
    %c0_i32 = arith.constant 0 : i32
    %0 = arith.cmpi eq, %arg2, %c0_i32 : i32
    %1 = arith.extui %0 : i1 to i32
    %c0_i32_0 = arith.constant 0 : i32
    %2 = arith.cmpi ne, %1, %c0_i32_0 : i32
    scf.if %2 {
      %cst_10 = arith.constant 0.000000e+00 : f32
      %13 = vector.broadcast %cst_10 : f32 to vector<16x32xf32>
      %c0_11 = arith.constant 0 : index
      %c0_12 = arith.constant 0 : index
      %14 = vector.load %arg7[%c0_11, %c0_12] : memref<16x32xf32, #tpu.memory_space<vmem>>, vector<16x32xf32>
      tpu.vector_store %arg7[%c0_11, %c0_12], %13 {strides = array<i32>} : memref<16x32xf32, #tpu.memory_space<vmem>>, vector<16x32xf32>,
    } else {
    }
    %c0 = arith.constant 0 : index
    %c0_1 = arith.constant 0 : index
    %3 = vector.load %arg7[%c0, %c0_1] : memref<16x32xf32, #tpu.memory_space<vmem>>, vector<16x32xf32>
    %c0_2 = arith.constant 0 : index
    %c0_3 = arith.constant 0 : index
    %4 = vector.load %arg3[%c0_2, %c0_3] : memref<16x64xf32, #tpu.memory_space<vmem>>, vector<16x64xf32>
    %5 = arith.truncf %4 : vector<16x64xf32> to vector<16x64xbf16>
    %c0_4 = arith.constant 0 : index
    %c0_5 = arith.constant 0 : index
    %6 = vector.load %arg4[%c0_4, %c0_5] : memref<64x32xbf16, #tpu.memory_space<vmem>>, vector<64x32xbf16>
    %cst = arith.constant dense<0.000000e+00> : vector<16x32xf32>
    %7 = tpu.matmul %5, %6, %cst {dimension_numbers = #tpu.dot_dimension_numbers<[1], [0], [0], [1], [0, 0, 1, 1], [], []>} : vector<16x64xbf16>, vector<64x32xbf16>, vector<16x32xf32> -> vector<16x32xf32>
    %8 = arith.addf %3, %7 : vector<16x32xf32>
    %c0_6 = arith.constant 0 : index
    %c0_7 = arith.constant 0 : index
    %9 = vector.load %arg7[%c0_6, %c0_7] : memref<16x32xf32, #tpu.memory_space<vmem>>, vector<16x32xf32>
    tpu.vector_store %arg7[%c0_6, %c0_7], %8 {strides = array<i32>} : memref<16x32xf32, #tpu.memory_space<vmem>>, vector<16x32xf32>,
    %c0_i32_8 = arith.constant 0 : i32
    %10 = arith.cmpi eq, %arg2, %c0_i32_8 : i32
    %11 = arith.extui %10 : i1 to i32
    %c0_i32_9 = arith.constant 0 : i32
    %12 = arith.cmpi ne, %11, %c0_i32_9 : i32
    scf.if %12 {
      %c0_10 = arith.constant 0 : index
      %c0_11 = arith.constant 0 : index
      %13 = vector.load %arg7[%c0_10, %c0_11] : memref<16x32xf32, #tpu.memory_space<vmem>>, vector<16x32xf32>
      %c0_12 = arith.constant 0 : index
      %c0_13 = arith.constant 0 : index
      %14 = vector.load %arg5[%c0_12, %c0_13] : memref<1x32xf32, #tpu.memory_space<vmem>>, vector<1x32xf32>
      %15 = vector.broadcast %14 : vector<1x32xf32> to vector<16x32xf32>
      %16 = arith.addf %13, %15 : vector<16x32xf32>
      %c0_14 = arith.constant 0 : index
      %c0_15 = arith.constant 0 : index
      %17 = vector.load %arg6[%c0_14, %c0_15] : memref<16x32xf32, #tpu.memory_space<vmem>>, vector<16x32xf32>
      tpu.vector_store %arg6[%c0_14, %c0_15], %16 {strides = array<i32>} : memref<16x32xf32, #tpu.memory_space<vmem>>, vector<16x32xf32>,
    } else {
    }
    return
  }
  func.func @transform_0(%arg0: i32, %arg1: i32, %arg2: i32) -> (i32, i32) {
    %c0_i32 = arith.constant 0 : i32
    return %arg0, %arg2 : i32, i32
  }
  func.func @transform_1(%arg0: i32, %arg1: i32, %arg2: i32) -> (i32, i32) {
    %c0_i32 = arith.constant 0 : i32
    return %arg2, %arg1 : i32, i32
  }
  func.func @transform_2(%arg0: i32, %arg1: i32, %arg2: i32) -> (i32, i32) {
    %c0_i32 = arith.constant 0 : i32
    %c0_i32_0 = arith.constant 0 : i32
    return %c0_i32, %arg1 : i32, i32
  }
  func.func @transform_3(%arg0: i32, %arg1: i32, %arg2: i32) -> (i32, i32) {
    %c0_i32 = arith.constant 0 : i32
    return %arg0, %arg1 : i32, i32
  }
}

module attributes {stable_mosaic.version = 11 : i64} {
  func.func @_linear_kernel(%arg0: i32, %arg1: i32, %arg2: i32, %arg3: memref<16x32xf32, #tpu.memory_space<vmem>>, %arg4: memref<32x32xbf16, #tpu.memory_space<vmem>>, %arg5: memref<16x32xf32, #tpu.memory_space<vmem>>, %arg6: memref<16x32xf32, #tpu.memory_space<vmem>>) attributes {dimension_semantics = [#tpu.dimension_semantics<parallel>, #tpu.dimension_semantics<parallel>, #tpu.dimension_semantics<arbitrary>], iteration_bounds = array<i64: 1, 1, 1>, scalar_prefetch = 0 : i64, scratch_operands = 1 : i64, tpu.core_type = #tpu.core_type<tc>, window_params = [{transform_indices = @transform_0, window_bounds = array<i64: 16, 32>}, {transform_indices = @transform_1, window_bounds = array<i64: 32, 32>}, {transform_indices = @transform_2, window_bounds = array<i64: 16, 32>}]} {
    %c0_i32 = arith.constant 0 : i32
    %0 = arith.cmpi eq, %arg2, %c0_i32 : i32
    %1 = arith.extui %0 : i1 to i32
    %c0_i32_0 = arith.constant 0 : i32
    %2 = arith.cmpi ne, %1, %c0_i32_0 : i32
    scf.if %2 {
      %cst_10 = arith.constant 0.000000e+00 : f32
      %13 = vector.broadcast %cst_10 : f32 to vector<16x32xf32>
      %c0_11 = arith.constant 0 : index
      %c0_12 = arith.constant 0 : index
      %14 = vector.load %arg6[%c0_11, %c0_12] : memref<16x32xf32, #tpu.memory_space<vmem>>, vector<16x32xf32>
      tpu.vector_store %arg6[%c0_11, %c0_12], %13 {strides = array<i32>} : memref<16x32xf32, #tpu.memory_space<vmem>>, vector<16x32xf32>,
    } else {
    }
    %c0 = arith.constant 0 : index
    %c0_1 = arith.constant 0 : index
    %3 = vector.load %arg6[%c0, %c0_1] : memref<16x32xf32, #tpu.memory_space<vmem>>, vector<16x32xf32>
    %c0_2 = arith.constant 0 : index
    %c0_3 = arith.constant 0 : index
    %4 = vector.load %arg3[%c0_2, %c0_3] : memref<16x32xf32, #tpu.memory_space<vmem>>, vector<16x32xf32>
    %5 = arith.truncf %4 : vector<16x32xf32> to vector<16x32xbf16>
    %c0_4 = arith.constant 0 : index
    %c0_5 = arith.constant 0 : index
    %6 = vector.load %arg4[%c0_4, %c0_5] : memref<32x32xbf16, #tpu.memory_space<vmem>>, vector<32x32xbf16>
    %cst = arith.constant dense<0.000000e+00> : vector<16x32xf32>
    %7 = tpu.matmul %5, %6, %cst {dimension_numbers = #tpu.dot_dimension_numbers<[1], [0], [0], [1], [0, 0, 1, 1], [], []>} : vector<16x32xbf16>, vector<32x32xbf16>, vector<16x32xf32> -> vector<16x32xf32>
    %8 = arith.addf %3, %7 : vector<16x32xf32>
    %c0_6 = arith.constant 0 : index
    %c0_7 = arith.constant 0 : index
    %9 = vector.load %arg6[%c0_6, %c0_7] : memref<16x32xf32, #tpu.memory_space<vmem>>, vector<16x32xf32>
    tpu.vector_store %arg6[%c0_6, %c0_7], %8 {strides = array<i32>} : memref<16x32xf32, #tpu.memory_space<vmem>>, vector<16x32xf32>,
    %c0_i32_8 = arith.constant 0 : i32
    %10 = arith.cmpi eq, %arg2, %c0_i32_8 : i32
    %11 = arith.extui %10 : i1 to i32
    %c0_i32_9 = arith.constant 0 : i32
    %12 = arith.cmpi ne, %11, %c0_i32_9 : i32
    scf.if %12 {
      %c0_10 = arith.constant 0 : index
      %c0_11 = arith.constant 0 : index
      %13 = vector.load %arg6[%c0_10, %c0_11] : memref<16x32xf32, #tpu.memory_space<vmem>>, vector<16x32xf32>
      %c0_12 = arith.constant 0 : index
      %c0_13 = arith.constant 0 : index
      %14 = vector.load %arg5[%c0_12, %c0_13] : memref<16x32xf32, #tpu.memory_space<vmem>>, vector<16x32xf32>
      tpu.vector_store %arg5[%c0_12, %c0_13], %13 {strides = array<i32>} : memref<16x32xf32, #tpu.memory_space<vmem>>, vector<16x32xf32>,
    } else {
    }
    return
  }
  func.func @transform_0(%arg0: i32, %arg1: i32, %arg2: i32) -> (i32, i32) {
    %c0_i32 = arith.constant 0 : i32
    return %arg0, %arg2 : i32, i32
  }
  func.func @transform_1(%arg0: i32, %arg1: i32, %arg2: i32) -> (i32, i32) {
    %c0_i32 = arith.constant 0 : i32
    return %arg2, %arg1 : i32, i32
  }
  func.func @transform_2(%arg0: i32, %arg1: i32, %arg2: i32) -> (i32, i32) {
    %c0_i32 = arith.constant 0 : i32
    return %arg0, %arg1 : i32, i32
  }
}

</mosaic_0001>

<bundles_post_ra>
// kernel: _lambda_.56
= control target key start
LH: loop header
LB: loop body
LE: loop exit
PB: predicated region body
PF: predicated region fallthrough
CT: control target
= control target key end

     0   :  { %vm23_vm0 = vcmask 261120   ;;  %s136_s0 = inlined_call_operand.vmem [shape: f32[16,32], index: 0, kind: input, shape index: {}]   ;;  %s137_s1 = inlined_call_operand.vmem [shape: f32[16,32], index: 1, kind: input, shape index: {}]   ;;  %s138_s2 = inlined_call_operand.vmem [shape: f32[1,32], index: 2, kind: input, shape index: {}]   ;;  %s139_s3 = inlined_call_operand.vmem [shape: f32[1,32], index: 3, kind: input, shape index: {}]   ;;  %s140_s4 = inlined_call_operand.vmem [shape: f32[16,32], index: 4, kind: output, shape index: {}]  }
   0x1   :  { %v17_v0 = vld [vmem:[%s136_s0] sm:$0xff]  ;;  %v18_v2 = vld [vmem:[%s136_s0 + $0x8] sm:$0xff] }
   0x2   :  { %v19_v1 = vld [vmem:[%s137_s1] sm:$0xff]  ;;  %v20_v4 = vld [vmem:[%s137_s1 + $0x8] sm:$0xff] }
   0x3   :  { %v21_v3 = vadd.f32 %v19_v1, %v17_v0  ;;  %v22_v5 = vadd.f32 %v20_v4, %v18_v2  ;;  %v75_v25 = vld [vmem:[%s138_s2] ss:$0 sm:$0xff] }
   0x4   :  { %v76_v27 = vld [vmem:[%s139_s3] ss:$0 sm:$0xff] }
   0x5   :  { %v24_v6 = vsel %vm23_vm0, %v21_v3, 0.0  ;;  %v27_v7 = vsel %vm23_vm0, %v22_v5, 0.0 }
   0x6   :  { %25 = vadd.xlane.f32.xlu0 %v24_v6 }
   0xa   :  { %28 = vadd.xlane.f32.xlu0 %v27_v7 }
  0x93   :  { %v26_v8 = vpop.xlane.xlu0 %25 }
  0x94   :  { %v31_v9 = vmul.f32 0.03125, %v26_v8 }
  0x96   :  { %v33_v10 = vsub.f32 %v21_v3, %v31_v9 }
  0x97   :  { %v29_v11 = vpop.xlane.xlu0 %28 }
  0x98   :  { %v32_v12 = vmul.f32 0.03125, %v29_v11  ;;  %v35_v13 = vmul.f32 %v33_v10, %v33_v10 }
  0x9a   :  { %v34_v14 = vsub.f32 %v22_v5, %v32_v12  ;;  %v37_v15 = vsel %vm23_vm0, %v35_v13, 0.0 }
  0x9b   :  { %38 = vadd.xlane.f32.xlu1 %v37_v15 }
  0x9c   :  { %v36_v16 = vmul.f32 %v34_v14, %v34_v14 }
  0x9e   :  { %v40_v17 = vsel %vm23_vm0, %v36_v16, 0.0 }
  0x9f   :  { %41 = vadd.xlane.f32.xlu1 %v40_v17 }
 0x128   :  { %v39_v18 = vpop.xlane.xlu1 %38 }
 0x129   :  { %v43_v19 = vmul.f32 0.03125, %v39_v18 }
 0x12b   :  { %v45_v20 = vadd.f32 1e-06, %v43_v19 }
 0x12c   :  { %v42_v21 = vpop.xlane.xlu1 %41 }
 0x12d   :  { %77 = vrsqrt.f32 %v45_v20  ;;  %v44_v22 = vmul.f32 0.03125, %v42_v21 }
 0x12f   :  { %v46_v23 = vadd.f32 1e-06, %v44_v22 }
 0x131   :  { %79 = vrsqrt.f32 %v46_v23 }
 0x137   :  { %v78_v24 = vpop.eup %77 }
 0x138   :  { %v49_v26 = vmul.f32 %v78_v24, %v33_v10 }
 0x13a   :  { %v58_v28 = vmul.f32 %v75_v25, %v49_v26 }
 0x13b   :  { %v80_v29 = vpop.eup %79 }
 0x13c   :  { %v67_v30 = vadd.f32 %v76_v27, %v58_v28  ;;  %v50_v31 = vmul.f32 %v80_v29, %v34_v14 }
 0x13e   :  { %69 = vst.msk [vmem:[%s140_s4] sm:$0xff] %vm23_vm0, %v67_v30  ;;  %v59_v32 = vmul.f32 %v75_v25, %v50_v31 }
 0x140   :  { %v68_v33 = vadd.f32 %v76_v27, %v59_v32 }
 0x142   :  { %70 = vst.msk [vmem:[%s140_s4 + $0x8] sm:$0xff] %vm23_vm0, %v68_v33 }

// kernel: _lambda_.59
= control target key start
LH: loop header
LB: loop body
LE: loop exit
PB: predicated region body
PF: predicated region fallthrough
CT: control target
= control target key end

     0   :  { %vm16_vm0 = vcmask 261120   ;;  %v118_v0 = vmov 0.0   ;;  %vm119_vm1 = vmmov 0   ;;  %s160_s1 = inlined_call_operand.vmem [shape: bf16[32,32], index: 1, kind: input, shape index: {}]   ;;  %s161_s0 = inlined_call_operand.vmem [shape: f32[16,32], index: 0, kind: input, shape index: {}]   ;;  %s162_s2 = inlined_call_operand.vmem [shape: f32[16,32], index: 2, kind: output, shape index: {}]  }
   0x1   :  { %106 = vmatprep.subr.bf16.mxu0 %v118_v0  ;;  %v116_v1 = vld [vmem:[%s160_s1] sm:$0xff]   ;;  %110 = vmatprep.mubr.msk.bf16.mxu0 %vm119_vm1, %v118_v0  ;;  %17 = vst.msk [vmem:[#allocation2] sm:$0xff] %vm16_vm0, %v118_v0  ;;  %18 = vst.msk [vmem:[#allocation2 + $0x8] sm:$0xff] %vm16_vm0, %v118_v0  ;;  %v117_v2 = vld [vmem:[%s160_s1 + $0x8] sm:$0xff]  }
   0x2   :  { %107 = vmatpush3.bf16.msra.mxu0 %v116_v1  ;;  %v21_v3 = vld [vmem:[%s161_s0] sm:$0xff]  ;;  %v22_v4 = vld [vmem:[%s161_s0 + $0x8] sm:$0xff] }
   0x3   :  { %108 = vmatprep.subr.bf16.mxu0 %v118_v0  ;;  %v23_v5 = vpack.c.bf16 %v22_v4, %v21_v3 }
   0x6   :  { %109 = vmatpush3.bf16.msra.mxu0 %v117_v2 }
   0x8   :  { %v19_v6 = vld [vmem:[#allocation2] sm:$0xff]  ;;  %v20_v8 = vld [vmem:[#allocation2 + $0x8] sm:$0xff] }
   0x9   :  { %111 = vmatmul.mubr.msk.bf16.vlgmr.msra.gmra.mrb[0].mxu0 %vm16_vm0, %v23_v5 }
  0xdc   :  { %v78_v7 = vpop.f32.mrb[0].mxu0 }
  0xdd   :  { %v85_v9 = vadd.f32 %v78_v7, %v19_v6  ;;  %v112_v10 = vpop.f32.mrb[1].mxu0 }
  0xde   :  { %v81_v11 = vpop.f32.mrb[2].mxu0 }
  0xdf   :  { %87 = vst.msk [vmem:[#allocation2] sm:$0xff] %vm16_vm0, %v85_v9  ;;  %v86_v12 = vadd.f32 %v81_v11, %v20_v8  ;;  %v113_v13 = vpop.f32.mrb[3].mxu0 }
  0xe1   :  { %88 = vst.msk [vmem:[#allocation2 + $0x8] sm:$0xff] %vm16_vm0, %v86_v12 }
  0xe6   :  { %v92_v14 = vld [vmem:[#allocation2] sm:$0xff] }
  0xe7   :  { %94 = vst.msk [vmem:[%s162_s2] sm:$0xff] %vm16_vm0, %v92_v14 }
  0xe8   :  { %v93_v15 = vld [vmem:[#allocation2 + $0x8] sm:$0xff] }
  0xe9   :  { %95 = vst.msk [vmem:[%s162_s2 + $0x8] sm:$0xff] %vm16_vm0, %v93_v15 }

// kernel: _lambda_.57
= control target key start
LH: loop header
LB: loop body
LE: loop exit
PB: predicated region body
PF: predicated region fallthrough
CT: control target
= control target key end

     0   :  { %vm16_vm0 = vcmask 785408   ;;  %v119_v0 = vmov 0.0   ;;  %vm120_vm1 = vmmov 0   ;;  %vm40_vm2 = vcmask 261120   ;;  %s160_s1 = inlined_call_operand.vmem [shape: bf16[32,96], index: 1, kind: input, shape index: {}]   ;;  %s161_s0 = inlined_call_operand.vmem [shape: f32[16,32], index: 0, kind: input, shape index: {}]   ;;  %s162_s2 = inlined_call_operand.vmem [shape: f32[16,96], index: 2, kind: output, shape index: {}]  }
   0x1   :  { %107 = vmatprep.subr.bf16.mxu0 %v119_v0  ;;  %v117_v1 = vld [vmem:[%s160_s1] sm:$0xff]   ;;  %111 = vmatprep.mubr.msk.bf16.mxu0 %vm120_vm1, %v119_v0  ;;  %17 = vst.msk [vmem:[#allocation2] sm:$0xff] %vm16_vm0, %v119_v0  ;;  %18 = vst.msk [vmem:[#allocation2 + $0x8] sm:$0xff] %vm16_vm0, %v119_v0  ;;  %v118_v2 = vld [vmem:[%s160_s1 + $0x8] sm:$0xff]  }
   0x2   :  { %108 = vmatpush3.bf16.msra.mxu0 %v117_v1  ;;  %v21_v3 = vld [vmem:[%s161_s0] sm:$0xff]  ;;  %v22_v4 = vld [vmem:[%s161_s0 + $0x8] sm:$0xff] }
   0x3   :  { %109 = vmatprep.subr.bf16.mxu0 %v119_v0  ;;  %v23_v5 = vpack.c.bf16 %v22_v4, %v21_v3 }
   0x6   :  { %110 = vmatpush3.bf16.msra.mxu0 %v118_v2 }
   0x8   :  { %v19_v6 = vld [vmem:[#allocation2] sm:$0xff]  ;;  %v20_v8 = vld [vmem:[#allocation2 + $0x8] sm:$0xff] }
   0x9   :  { %112 = vmatmul.mubr.msk.bf16.vlgmr.msra.gmra.mrb[0].mxu0 %vm40_vm2, %v23_v5 }
  0xdc   :  { %v78_v7 = vpop.f32.mrb[0].mxu0 }
  0xdd   :  { %v85_v9 = vadd.f32 %v78_v7, %v19_v6  ;;  %v113_v10 = vpop.f32.mrb[1].mxu0 }
  0xde   :  { %v81_v11 = vpop.f32.mrb[2].mxu0 }
  0xdf   :  { %88 = vst.msk [vmem:[#allocation2] sm:$0xff] %vm16_vm0, %v85_v9  ;;  %v86_v12 = vadd.f32 %v81_v11, %v20_v8  ;;  %v114_v13 = vpop.f32.mrb[3].mxu0 }
  0xe1   :  { %89 = vst.msk [vmem:[#allocation2 + $0x8] sm:$0xff] %vm16_vm0, %v86_v12 }
  0xe6   :  { %v93_v14 = vld [vmem:[#allocation2] sm:$0xff] }
  0xe7   :  { %95 = vst.msk [vmem:[%s162_s2] sm:$0xff] %vm16_vm0, %v93_v14 }
  0xe8   :  { %v94_v15 = vld [vmem:[#allocation2 + $0x8] sm:$0xff] }
  0xe9   :  { %96 = vst.msk [vmem:[%s162_s2 + $0x8] sm:$0xff] %vm16_vm0, %v94_v15 }

// kernel: _lambda_.58
= control target key start
LH: loop header
LB: loop body
LE: loop exit
PB: predicated region body
PF: predicated region fallthrough
CT: control target
= control target key end

     0   :  { %s964_s15 = smov 0   ;;  %s1070_s0 = inlined_call_operand.vmem [shape: f32[2,8,32], index: 0, kind: input, shape index: {}]   ;;  %s1071_s1 = inlined_call_operand.vmem [shape: f32[2,8,32], index: 1, kind: input, shape index: {}]   ;;  %s1072_s2 = inlined_call_operand.vmem [shape: f32[2,8,32], index: 2, kind: input, shape index: {}]   ;;  %s1073_s3 = inlined_call_operand.vmem [shape: f32[2,8,8], index: 3, kind: input, shape index: {}]   ;;  %s1074_s4 = inlined_call_operand.vmem [shape: f32[2,8,32], index: 4, kind: output, shape index: {}]  }
   0x1 LB: > { %s807_s16 = sadd.s32 4294967295, %s929_s15   ;;  %p811_p0 = scmp.ge.s32.totalorder %s929_s15, 1  ;;  %s929_s15 = sphi %s964_s15, %s14_s15  }
   0x2   : > { %p188_p1 = scmp.lt.s32.totalorder %s929_s15, 3 }
   0x4   : > { %p189_p2 = pnand %p811_p0, %p188_p1 }
   0x5   : > { %p224_p3 = scmp.lt.s32.totalorder (!%p189_p2), %s807_s16, 1  ;;  %v931_v0 = vmov (!%p189_p2), 0.0   ;;  %vm932_vm0 = vmmov (!%p189_p2), 0   ;;  %vm252_vm1 = vcmask (!%p189_p2), 64512   ;;  %s933_s27 = smov (!%p189_p2), 120   ;;  %vm316_vm2 = vcmask (!%p189_p2), 1043456  }
   0x6   : > { %192 = sbr.rel (%p189_p2) target bundleno = 1481 (0x5c9), region = 36  ;;  %843 = vmatprep.subr.bf16.mxu0 (!%p189_p2), %v931_v0  ;;  %845 = vmatprep.mubr.msk.bf16.mxu0 (!%p189_p2), %vm932_vm0, %v931_v0  ;;  %s934_s28 = smov (!%p189_p2), 112   ;;  %vm712_vm3 = vcmask (!%p189_p2), 130048   ;;  %vm714_vm4 = vcmask (!%p189_p2), 195584   ;;  %vm716_vm5 = vcmask (!%p189_p2), 261120  }
   0x7   : > { %849 = vmatprep.subr.bf16.mxu1 (!%p189_p2), %v931_v0  ;;  %851 = vmatprep.mubr.msk.bf16.mxu1 (!%p189_p2), %vm932_vm0, %v931_v0  ;;  %s935_s29 = smov (!%p189_p2), 104   ;;  %s936_s7 = smov (!%p189_p2), 8  }
   0x8   : > { %s937_s8 = smov (!%p189_p2), 16   ;;  %s938_s9 = smov (!%p189_p2), 24  }
   0xd   : > { %s1076_s16 = smov (!%p224_p3, %s807_s16), 1 }
   0xe   : > { %s978_s17 = sshll.u32 %s1076_s16, 3 }
   0xf   : > { %s231_s20 = scalar_lea.vmem %s1071_s1, %s978_s17  ;;  %s227_s23 = scalar_lea.vmem %s1070_s0, %s978_s17 }
  0x10   : > { %v246_v1 = vld [vmem:[%s231_s20] sm:$0xff]  ;;  %s239_s26 = scalar_lea.vmem %s1073_s3, %s978_s17  ;;  %s235_s6 = scalar_lea.vmem %s1072_s2, %s978_s17 }
  0x11   : > { %v250_v2 = vpack.c.bf16 %v246_v1, %v246_v1  ;;  %v245_v4 = vld [vmem:[%s227_s23] sm:$0xff]  ;;  %s243_s12 = scalar_lea.vmem %s1074_s4, %s978_s17 }
  0x12   : > { %v249_v5 = vpack.c.bf16 %v245_v4, %v245_v4  ;;  %v997_v7 = vld [vmem:[%s239_s26] sm:$0xff] }
  0x13   : > { %v257_v3 = vsel %vm252_vm1, %v250_v2, 0  ;;  %364 = vrot.lane.b32.xlu1 %v250_v2, %s933_s27  ;;  %v247_v19 = vld [vmem:[%s235_s6] sm:$0xff] }
  0x14   : > { %844 = vmatpush3.bf16.xpose.msra.mxu0 %v257_v3  ;;  %v1011_v20 = vpack.c.bf16 %v247_v19, %v247_v19 }
  0x15   : > { %861 = vmatprep.subr.bf16.mxu0 %v931_v0 }
  0x16   : > { %v318_v21 = vsel %vm316_vm2, %v1011_v20, 0 }
  0x17   : > { %361 = vrot.lane.b32.xlu1 %v249_v5, %s933_s27  ;;  %850 = vmatpush3.bf16.msra.mxu1 %v318_v21 }
  0x18   : > { %855 = vmatprep.subr.bf16.mxu1 %v931_v0 }
  0x1b   : > { %846 = vmatmul.mubr.msk.bf16.vlgmr.msra.gmra.mrb[0].mxu0 %vm252_vm1, %v249_v5  ;;  %475 = vrot.lane.b32.xlu1 %v249_v5, %s934_s28 }
  0x1c   : > { %863 = vmatprep.mubr.msk.bf16.mxu0 %vm932_vm0, %v931_v0 }
  0x1f   : > { %589 = vrot.lane.b32.xlu1 %v250_v2, %s935_s29 }
  0x23   : > { %587 = vrot.lane.b32.xlu1 %v249_v5, %s935_s29 }
  0x85   : > { %v365_v24 = vpop.permute.xlu1 %364 }
  0x86   : > { %v370_v26 = vsel %vm252_vm1, %v365_v24, 0 }
  0x89   : > { %v362_v28 = vpop.permute.xlu1 %361 }
  0x8d   : > { %v476_v30 = vpop.permute.xlu1 %475 }
  0x91   : > { %v590_v32 = vpop.permute.xlu1 %589 }
  0x92   : > { %v595_v33 = vsel %vm252_vm1, %v590_v32, 0 }
  0x95   : > { %v588_v34 = vpop.permute.xlu1 %587 }
  0xee   : > { %v293_v6 = vpop.f32.mrb[0].mxu0 }
  0xef   : > { %v299_v8 = vmul.f32 0.35355338, %v293_v6  ;;  %v847_v9 = vpop.f32.mrb[1].mxu0 }
  0xf0   : > { %v296_v10 = vpop.f32.mrb[2].mxu0 }
  0xf1   : > { %v848_v11 = vpop.f32.mrb[3].mxu0  ;;  %v300_v12 = vadd.f32 %v299_v8, %v997_v7 }
  0xf3   : > { %v301_v13 = vsel %vm252_vm1, %v300_v12, -inf }
  0xf4   : > { %302 = vmax.xlane.f32.xlu0 %v301_v13 }
 0x181   : > { %v303_v14 = vpop.xlane.xlu0 %302 }
 0x182   : > { %v304_v15 = vsub.f32 %v300_v12, %v303_v14 }
 0x184   : > { %v305_v16 = vmul.f32 1.442695, %v304_v15 }
 0x186   : > { %907 = vpow2.f32 %v305_v16 }
 0x190   : > { %v908_v17 = vpop.eup %907 }
 0x191   : > { %v307_v18 = vsel %vm252_vm1, %v908_v17, 0.0 }
 0x192   : > { %308 = vadd.xlane.f32.xlu0 %v307_v18 }
 0x1a8   : > { %477 = vrot.lane.b32.xlu0 %v250_v2, %s934_s28 }
 0x21f   : > { %v309_v22 = vpop.xlane.xlu0 %308 }
 0x220   : > { %909 = vrcp.f32 %v309_v22 }
 0x223   : > { %v478_v29 = vpop.permute.xlu0 %477 }
 0x224   : > { %v483_v31 = vsel %vm252_vm1, %v478_v29, 0 }
 0x22a   : > { %v910_v23 = vpop.eup %909 }
 0x22b   : > { %v311_v25 = vmul.f32 %v910_v23, %v908_v17 }
 0x22d   : > { %v312_v27 = vpack.c.bf16 %v311_v25, %v311_v25 }
 0x22f   : > { %852 = vmatmul.mubr.msk.bf16.vlgmr.msra.gmra.mrb[0].mxu1 %vm252_vm1, %v312_v27 }
 0x230   : > { %856 = vmatpush3.bf16.xpose.msra.mxu1 %v370_v26  ;;  %857 = vmatprep.mubr.msk.bf16.mxu1 %vm932_vm0, %v931_v0 }
 0x231   : > { %867 = vmatprep.subr.bf16.mxu1 %v931_v0 }
 0x237   : > { %858 = vmatmul.mubr.msk.bf16.vlgmr.msra.gmra.mrb[4].mxu1 %vm252_vm1, %v362_v28 }
 0x238   : > { %868 = vmatpush3.bf16.xpose.msra.mxu1 %v483_v31  ;;  %869 = vmatprep.mubr.msk.bf16.mxu1 %vm932_vm0, %v931_v0 }
 0x239   : > { %879 = vmatprep.subr.bf16.mxu1 %v931_v0 }
 0x23f   : > { %870 = vmatmul.mubr.msk.bf16.vlgmr.msra.gmra.mrb[8].mxu1 %vm252_vm1, %v476_v30 }
 0x240   : > { %880 = vmatpush3.bf16.xpose.msra.mxu1 %v595_v33  ;;  %881 = vmatprep.mubr.msk.bf16.mxu1 %vm932_vm0, %v931_v0 }
 0x247   : > { %882 = vmatmul.mubr.msk.bf16.vlgmr.msra.gmra.mrb[12].mxu1 %vm252_vm1, %v588_v34 }
 0x302   : > { %v1032_v35 = vpop.f32.mrb[0].mxu1 }
 0x303   : > { %v853_v36 = vpop.f32.mrb[1].mxu1 }
 0x304   : > { %v357_v37 = vpop.f32.mrb[2].mxu1 }
 0x305   : > { %v854_v38 = vpop.f32.mrb[3].mxu1 }
 0x30a   : > { %v406_v39 = vpop.f32.mrb[4].mxu1 }
 0x30b   : > { %v412_v40 = vmul.f32 0.35355338, %v406_v39  ;;  %v859_v41 = vpop.f32.mrb[5].mxu1 }
 0x30c   : > { %v409_v42 = vpop.f32.mrb[6].mxu1 }
 0x30d   : > { %v860_v43 = vpop.f32.mrb[7].mxu1  ;;  %v413_v44 = vadd.f32 %v412_v40, %v997_v7 }
 0x30f   : > { %v414_v45 = vsel %vm252_vm1, %v413_v44, -inf }
 0x310   : > { %415 = vmax.xlane.f32.xlu1 %v414_v45 }
 0x312   : > { %v519_v46 = vpop.f32.mrb[8].mxu1 }
 0x313   : > { %v525_v47 = vmul.f32 0.35355338, %v519_v46  ;;  %v871_v48 = vpop.f32.mrb[9].mxu1 }
 0x314   : > { %v522_v49 = vpop.f32.mrb[10].mxu1 }
 0x315   : > { %v526_v50 = vadd.f32 %v525_v47, %v997_v7  ;;  %v872_v51 = vpop.f32.mrb[11].mxu1 }
 0x317   : > { %v527_v52 = vsel %vm252_vm1, %v526_v50, -inf }
 0x318   : > { %528 = vmax.xlane.f32.xlu0 %v527_v52 }
 0x31a   : > { %v631_v53 = vpop.f32.mrb[12].mxu1 }
 0x31b   : > { %v637_v54 = vmul.f32 0.35355338, %v631_v53  ;;  %v883_v55 = vpop.f32.mrb[13].mxu1 }
 0x31c   : > { %v634_v56 = vpop.f32.mrb[14].mxu1 }
 0x31d   : > { %v638_v57 = vadd.f32 %v637_v54, %v997_v7  ;;  %v884_v58 = vpop.f32.mrb[15].mxu1 }
 0x31f   : > { %v639_v59 = vsel %vm252_vm1, %v638_v57, -inf }
 0x320   : > { %640 = vmax.xlane.f32.xlu1 %v639_v59 }
 0x39d   : > { %v416_v60 = vpop.xlane.xlu1 %415 }
 0x39e   : > { %v417_v61 = vsub.f32 %v413_v44, %v416_v60 }
 0x3a0   : > { %v418_v62 = vmul.f32 1.442695, %v417_v61 }
 0x3a2   : > { %911 = vpow2.f32 %v418_v62 }
 0x3a5   : > { %v529_v63 = vpop.xlane.xlu0 %528 }
 0x3a6   : > { %v530_v1 = vsub.f32 %v526_v50, %v529_v63 }
 0x3a8   : > { %v531_v2 = vmul.f32 1.442695, %v530_v1 }
 0x3aa   : > { %913 = vpow2.f32 %v531_v2 }
 0x3ac   : > { %v912_v3 = vpop.eup %911 }
 0x3ad   : > { %v420_v4 = vsel %vm252_vm1, %v912_v3, 0.0  ;;  %v641_v7 = vpop.xlane.xlu1 %640 }
 0x3ae   : > { %421 = vadd.xlane.f32.xlu1 %v420_v4  ;;  %v642_v8 = vsub.f32 %v638_v57, %v641_v7 }
 0x3b0   : > { %v643_v9 = vmul.f32 1.442695, %v642_v8 }
 0x3b2   : > { %915 = vpow2.f32 %v643_v9 }
 0x3b4   : > { %v914_v5 = vpop.eup %913 }
 0x3b5   : > { %v533_v6 = vsel %vm252_vm1, %v914_v5, 0.0 }
 0x3b6   : > { %534 = vadd.xlane.f32.xlu0 %v533_v6 }
 0x3bc   : > { %v916_v10 = vpop.eup %915 }
 0x3bd   : > { %v645_v11 = vsel %vm252_vm1, %v916_v10, 0.0 }
 0x3bf   : > { %539 = vrot.lane.b32.xlu1 %v1011_v20, %s934_s28 }
 0x3cc   : > { %427 = vrot.lane.b32.xlu0 %v1011_v20, %s933_s27 }
 0x3e3   : > { %646 = vadd.xlane.f32.xlu1 %v645_v11 }
 0x3f4   : > { %651 = vrot.lane.b32.xlu1 %v1011_v20, %s935_s29 }
 0x43b   : > { %v422_v12 = vpop.xlane.xlu1 %421 }
 0x43c   : > { %917 = vrcp.f32 %v422_v12 }
 0x43f   : > { %v540_v18 = vpop.permute.xlu1 %539 }
 0x440   : > { %v545_v21 = vsel %vm316_vm2, %v540_v18, 0 }
 0x443   : > { %v535_v13 = vpop.xlane.xlu0 %534 }
 0x444   : > { %919 = vrcp.f32 %v535_v13 }
 0x446   : > { %v918_v14 = vpop.eup %917 }
 0x447   : > { %v424_v15 = vmul.f32 %v918_v14, %v912_v3  ;;  %v428_v16 = vpop.permute.xlu0 %427 }
 0x448   : > { %v433_v17 = vsel %vm316_vm2, %v428_v16, 0 }
 0x449   : > { %862 = vmatpush3.bf16.msra.mxu0 %v433_v17  ;;  %v425_v19 = vpack.c.bf16 %v424_v15, %v424_v15 }
 0x44a   : > { %873 = vmatprep.subr.bf16.mxu0 %v931_v0 }
 0x44c   : > { %864 = vmatmul.mubr.msk.bf16.vlgmr.msra.gmra.mrb[4].mxu0 %vm252_vm1, %v425_v19 }
 0x44d   : > { %874 = vmatpush3.bf16.msra.mxu0 %v545_v21  ;;  %875 = vmatprep.mubr.msk.bf16.mxu0 %vm932_vm0, %v931_v0 }
 0x44e   : > { %v920_v20 = vpop.eup %919  ;;  %885 = vmatprep.subr.bf16.mxu0 %v931_v0 }
 0x44f   : > { %v537_v22 = vmul.f32 %v920_v20, %v914_v5 }
 0x451   : > { %v538_v23 = vpack.c.bf16 %v537_v22, %v537_v22 }
 0x454   : > { %876 = vmatmul.mubr.msk.bf16.vlgmr.msra.gmra.mrb[8].mxu0 %vm252_vm1, %v538_v23 }
 0x455   : > { %887 = vmatprep.mubr.msk.bf16.mxu0 %vm932_vm0, %v931_v0 }
 0x470   : > { %v647_v24 = vpop.xlane.xlu1 %646 }
 0x471   : > { %921 = vrcp.f32 %v647_v24 }
 0x474   : > { %v652_v25 = vpop.permute.xlu1 %651 }
 0x475   : > { %v657_v26 = vsel %vm316_vm2, %v652_v25, 0 }
 0x476   : > { %886 = vmatpush3.bf16.msra.mxu0 %v657_v26 }
 0x47b   : > { %v922_v27 = vpop.eup %921 }
 0x47c   : > { %v649_v28 = vmul.f32 %v922_v27, %v916_v10 }
 0x47e   : > { %v650_v29 = vpack.c.bf16 %v649_v28, %v649_v28 }
 0x480   : > { %888 = vmatmul.mubr.msk.bf16.vlgmr.msra.gmra.mrb[12].mxu0 %vm252_vm1, %v650_v29 }
 0x51f   : > { %v469_v30 = vpop.f32.mrb[4].mxu0 }
 0x520   : > { %700 = vrot.lane.b32.xlu0 %v469_v30, %s936_s7  ;;  %v865_v31 = vpop.f32.mrb[5].mxu0 }
 0x521   : > { %v472_v32 = vpop.f32.mrb[6].mxu0 }
 0x522   : > { %v866_v33 = vpop.f32.mrb[7].mxu0 }
 0x527   : > { %v581_v34 = vpop.f32.mrb[8].mxu0 }
 0x528   : > { %704 = vrot.lane.b32.xlu1 %v581_v34, %s937_s8  ;;  %v877_v0 = vpop.f32.mrb[9].mxu0 }
 0x529   : > { %v584_v36 = vpop.f32.mrb[10].mxu0 }
 0x52a   : > { %v878_v37 = vpop.f32.mrb[11].mxu0 }
 0x553   : > { %v693_v38 = vpop.f32.mrb[12].mxu0 }
 0x554   : > { %708 = vrot.lane.b32.xlu0 %v693_v38, %s938_s9  ;;  %v889_v39 = vpop.f32.mrb[13].mxu0 }
 0x555   : > { %v696_v40 = vpop.f32.mrb[14].mxu0 }
 0x556   : > { %v890_v41 = vpop.f32.mrb[15].mxu0 }
 0x592   : > { %v701_v42 = vpop.permute.xlu0 %700 }
 0x593   : > { %v711_v44 = vsel %vm252_vm1, %v1032_v35, %v701_v42 }
 0x59a   : > { %v705_v43 = vpop.permute.xlu1 %704 }
 0x59b   : > { %v713_v45 = vsel %vm712_vm3, %v711_v44, %v705_v43 }
 0x5c6   : > { %v709_v46 = vpop.permute.xlu0 %708 }
 0x5c7   : > { %v715_v47 = vsel %vm714_vm4, %v713_v45, %v709_v46 }
 0x5c8   : > { %717 = vst.msk [vmem:[%s243_s12] sm:$0xff] %vm716_vm5, %v715_v47 }
 0x5c9 PF: > { %s14_s15 = sadd.s32 1, %s929_s15  }
 0x5ca   : > { %p11_p4 = scmp.ge.s32.totalorder %s14_s15, 4  }
 0x5cc   :  { %13 = sbr.rel (!%p11_p4) target bundleno = 1 (0x1), region = 75 }

// kernel: _lambda_.46
= control target key start
LH: loop header
LB: loop body
LE: loop exit
PB: predicated region body
PF: predicated region fallthrough
CT: control target
= control target key end

     0   :  { %vm19_vm0 = vcmask 523264   ;;  %v134_v0 = vmov 0.0   ;;  %vm135_vm1 = vmmov 0   ;;  %vm43_vm2 = vcmask 261120   ;;  %s183_s1 = inlined_call_operand.vmem [shape: bf16[32,64], index: 1, kind: input, shape index: {}]   ;;  %s184_s0 = inlined_call_operand.vmem [shape: f32[16,32], index: 0, kind: input, shape index: {}]   ;;  %s185_s2 = inlined_call_operand.vmem [shape: f32[1,64], index: 2, kind: input, shape index: {}]   ;;  %s186_s3 = inlined_call_operand.vmem [shape: f32[16,64], index: 3, kind: output, shape index: {}]  }
   0x1   :  { %122 = vmatprep.subr.bf16.mxu0 %v134_v0  ;;  %v132_v1 = vld [vmem:[%s183_s1] sm:$0xff]   ;;  %126 = vmatprep.mubr.msk.bf16.mxu0 %vm135_vm1, %v134_v0  ;;  %20 = vst.msk [vmem:[#allocation2] sm:$0xff] %vm19_vm0, %v134_v0  ;;  %21 = vst.msk [vmem:[#allocation2 + $0x8] sm:$0xff] %vm19_vm0, %v134_v0  ;;  %v133_v2 = vld [vmem:[%s183_s1 + $0x8] sm:$0xff]  }
   0x2   :  { %123 = vmatpush3.bf16.msra.mxu0 %v132_v1  ;;  %v24_v3 = vld [vmem:[%s184_s0] sm:$0xff]  ;;  %v25_v4 = vld [vmem:[%s184_s0 + $0x8] sm:$0xff] }
   0x3   :  { %124 = vmatprep.subr.bf16.mxu0 %v134_v0  ;;  %v26_v5 = vpack.c.bf16 %v25_v4, %v24_v3  ;;  %v118_v14 = vld [vmem:[%s185_s2] ss:$0 sm:$0xff] }
   0x6   :  { %125 = vmatpush3.bf16.msra.mxu0 %v133_v2 }
   0x8   :  { %v22_v6 = vld [vmem:[#allocation2] sm:$0xff]  ;;  %v23_v8 = vld [vmem:[#allocation2 + $0x8] sm:$0xff] }
   0x9   :  { %127 = vmatmul.mubr.msk.bf16.vlgmr.msra.gmra.mrb[0].mxu0 %vm43_vm2, %v26_v5 }
  0xdc   :  { %v81_v7 = vpop.f32.mrb[0].mxu0 }
  0xdd   :  { %v88_v9 = vadd.f32 %v81_v7, %v22_v6  ;;  %v128_v10 = vpop.f32.mrb[1].mxu0 }
  0xde   :  { %v84_v11 = vpop.f32.mrb[2].mxu0 }
  0xdf   :  { %91 = vst.msk [vmem:[#allocation2] sm:$0xff] %vm19_vm0, %v88_v9  ;;  %v89_v12 = vadd.f32 %v84_v11, %v23_v8  ;;  %v129_v13 = vpop.f32.mrb[3].mxu0 }
  0xe1   :  { %92 = vst.msk [vmem:[#allocation2 + $0x8] sm:$0xff] %vm19_vm0, %v89_v12 }
  0xe6   :  { %v96_v15 = vld [vmem:[#allocation2] sm:$0xff] }
  0xe7   :  { %v105_v16 = vadd.f32 %v118_v14, %v96_v15 }
  0xe8   :  { %v97_v17 = vld [vmem:[#allocation2 + $0x8] sm:$0xff] }
  0xe9   :  { %v107_v18 = vmax.f32 %v105_v16, 0.0  ;;  %v106_v19 = vadd.f32 %v118_v14, %v97_v17 }
  0xeb   :  { %109 = vst.msk [vmem:[%s186_s3] sm:$0xff] %vm19_vm0, %v107_v18  ;;  %v108_v20 = vmax.f32 %v106_v19, 0.0 }
  0xed   :  { %110 = vst.msk [vmem:[%s186_s3 + $0x8] sm:$0xff] %vm19_vm0, %v108_v20 }

// kernel: _lambda_.62
= control target key start
LH: loop header
LB: loop body
LE: loop exit
PB: predicated region body
PF: predicated region fallthrough
CT: control target
= control target key end

     0   :  { %vm16_vm0 = vcmask 523264   ;;  %v119_v0 = vmov 0.0   ;;  %vm120_vm1 = vmmov 0   ;;  %vm40_vm2 = vcmask 261120   ;;  %s160_s1 = inlined_call_operand.vmem [shape: bf16[32,64], index: 1, kind: input, shape index: {}]   ;;  %s161_s0 = inlined_call_operand.vmem [shape: f32[16,32], index: 0, kind: input, shape index: {}]   ;;  %s162_s2 = inlined_call_operand.vmem [shape: f32[16,64], index: 2, kind: output, shape index: {}]  }
   0x1   :  { %107 = vmatprep.subr.bf16.mxu0 %v119_v0  ;;  %v117_v1 = vld [vmem:[%s160_s1] sm:$0xff]   ;;  %111 = vmatprep.mubr.msk.bf16.mxu0 %vm120_vm1, %v119_v0  ;;  %17 = vst.msk [vmem:[#allocation2] sm:$0xff] %vm16_vm0, %v119_v0  ;;  %18 = vst.msk [vmem:[#allocation2 + $0x8] sm:$0xff] %vm16_vm0, %v119_v0  ;;  %v118_v2 = vld [vmem:[%s160_s1 + $0x8] sm:$0xff]  }
   0x2   :  { %108 = vmatpush3.bf16.msra.mxu0 %v117_v1  ;;  %v21_v3 = vld [vmem:[%s161_s0] sm:$0xff]  ;;  %v22_v4 = vld [vmem:[%s161_s0 + $0x8] sm:$0xff] }
   0x3   :  { %109 = vmatprep.subr.bf16.mxu0 %v119_v0  ;;  %v23_v5 = vpack.c.bf16 %v22_v4, %v21_v3 }
   0x6   :  { %110 = vmatpush3.bf16.msra.mxu0 %v118_v2 }
   0x8   :  { %v19_v6 = vld [vmem:[#allocation2] sm:$0xff]  ;;  %v20_v8 = vld [vmem:[#allocation2 + $0x8] sm:$0xff] }
   0x9   :  { %112 = vmatmul.mubr.msk.bf16.vlgmr.msra.gmra.mrb[0].mxu0 %vm40_vm2, %v23_v5 }
  0xdc   :  { %v78_v7 = vpop.f32.mrb[0].mxu0 }
  0xdd   :  { %v85_v9 = vadd.f32 %v78_v7, %v19_v6  ;;  %v113_v10 = vpop.f32.mrb[1].mxu0 }
  0xde   :  { %v81_v11 = vpop.f32.mrb[2].mxu0 }
  0xdf   :  { %88 = vst.msk [vmem:[#allocation2] sm:$0xff] %vm16_vm0, %v85_v9  ;;  %v86_v12 = vadd.f32 %v81_v11, %v20_v8  ;;  %v114_v13 = vpop.f32.mrb[3].mxu0 }
  0xe1   :  { %89 = vst.msk [vmem:[#allocation2 + $0x8] sm:$0xff] %vm16_vm0, %v86_v12 }
  0xe6   :  { %v93_v14 = vld [vmem:[#allocation2] sm:$0xff] }
  0xe7   :  { %95 = vst.msk [vmem:[%s162_s2] sm:$0xff] %vm16_vm0, %v93_v14 }
  0xe8   :  { %v94_v15 = vld [vmem:[#allocation2 + $0x8] sm:$0xff] }
  0xe9   :  { %96 = vst.msk [vmem:[%s162_s2 + $0x8] sm:$0xff] %vm16_vm0, %v94_v15 }

// kernel: _lambda_.81
= control target key start
LH: loop header
LB: loop body
LE: loop exit
PB: predicated region body
PF: predicated region fallthrough
CT: control target
= control target key end

     0   :  { %v158_v1 = vmov 0.0   ;;  %vm159_vm0 = vmmov 0   ;;  %vm17_vm1 = vcmask 261120   ;;  %s209_s0 = inlined_call_operand.vmem [shape: f32[16,32], index: 0, kind: input, shape index: {}]   ;;  %s210_s1 = inlined_call_operand.vmem [shape: bf16[32,32], index: 1, kind: input, shape index: {}]   ;;  %s211_s2 = inlined_call_operand.hbm [shape: f32[16,32], index: 2, kind: output, shape index: {}]  }
   0x1   :  { %v132_v0 = vld [vmem:[%s210_s1] sm:$0xff]   ;;  %119 = vmatprep.subr.bf16.mxu0 %v158_v1  ;;  %v133_v2 = vld [vmem:[%s210_s1 + $0x8] sm:$0xff]   ;;  %123 = vmatprep.mubr.msk.bf16.mxu0 %vm159_vm0, %v158_v1 }
   0x2   :  { %120 = vmatpush3.bf16.msra.mxu0 %v132_v0  ;;  %v22_v3 = vld [vmem:[%s209_s0] sm:$0xff]  ;;  %v23_v4 = vld [vmem:[%s209_s0 + $0x8] sm:$0xff] }
   0x3   :  { %7 = vsyncpa [#allocation4], 0  ;;  %121 = vmatprep.subr.bf16.mxu0 %v158_v1  ;;  %18 = vst.msk [vmem:[#allocation2] sm:$0xff] %vm17_vm1, %v158_v1  ;;  %v24_v5 = vpack.c.bf16 %v23_v4, %v22_v3  ;;  %s160_s0 = smov [#allocation3]  }
   0x4   :  { %19 = vst.msk [vmem:[#allocation2 + $0x8] sm:$0xff] %vm17_vm1, %v158_v1  ;;  %s102_s1 = sshll.u32 %s160_s0, 4  ;;  %s103_s1 = int_to_ptr.vmem [resolvable:$true] %s102_s1 }
   0x5   :  { %s134_s17 = scalar_lea.vmem %s103_s1, 256  ;;  %p139_p1 = scmp.lt.s32.totalorder %s103_s1, %s103_s1 }
   0x6   :  { %122 = vmatpush3.bf16.msra.mxu0 %v133_v2  ;;  %p135_p0 = scmp.ne.s32.totalorder %s103_s1, %s134_s17  ;;  %p140_p2 = scmp.lt.s32.totalorder %s134_s17, %s134_s17 }
   0x8   :  { %p141_p3 = por %p140_p2, %p139_p1 }
   0x9   :  { %124 = vmatmul.mubr.msk.bf16.vlgmr.msra.gmra.mrb[0].mxu0 %vm17_vm1, %v24_v5 }
   0xa   :  { %v20_v6 = vld [vmem:[#allocation2] sm:$0xff]  ;;  %p142_p4 = pnand %p141_p3, %p135_p0 }
   0xb   :  { %v21_v8 = vld [vmem:[#allocation2 + $0x8] sm:$0xff] }
  0xdc   :  { %v79_v7 = vpop.f32.mrb[0].mxu0 }
  0xdd   :  { %v86_v9 = vadd.f32 %v79_v7, %v20_v6  ;;  %v125_v10 = vpop.f32.mrb[1].mxu0 }
  0xde   :  { %v82_v11 = vpop.f32.mrb[2].mxu0 }
  0xdf   :  { %88 = vst.msk [vmem:[#allocation2] sm:$0xff] %vm17_vm1, %v86_v9  ;;  %v87_v12 = vadd.f32 %v82_v11, %v21_v8  ;;  %v126_v13 = vpop.f32.mrb[3].mxu0 }
  0xe1   :  { %89 = vst.msk [vmem:[#allocation2 + $0x8] sm:$0xff] %vm17_vm1, %v87_v12 }
  0xe6   :  { %v93_v14 = vld [vmem:[#allocation2] sm:$0xff] }
  0xe7   :  { %95 = vst.msk [vmem:[#allocation3] sm:$0xff] %vm17_vm1, %v93_v14 }
  0xe8   :  { %v94_v15 = vld [vmem:[#allocation2 + $0x8] sm:$0xff] }
  0xe9   :  { %96 = vst.msk [vmem:[#allocation3 + $0x8] sm:$0xff] %vm17_vm1, %v94_v15 }
  0xea   :  { %145 = shalt.err (!%p142_p4)
}
  0xeb   :  { %s146_s20 = scalar_lea.hbm %s211_s2, 256 }
  0xec   :  { %p147_p5 = scmp.ne.s32.totalorder %s211_s2, %s146_s20  ;;  %p150_p6 = scmp.lt.u32.totalorder %s146_s20, %s211_s2 }
  0xee   :  { %p152_p7 = pnand %p150_p6, %p147_p5 }
  0xf0   :  { %155 = shalt.err (!%p152_p7)
}
  0xf1   :  { %s161_s25 = smov 128   ;;  %s162_s26 = smov 8  }
  0xf2   :  { %108 = dma.vmem_to_hbm [thread:$0]  %s103_s1, 256, %s211_s2, [#allocation4], %s161_s25, %s161_s25, %s162_s26  }
  0xf3   :  { %156 = dma.done.wait [#allocation4], 256  }
  0xf4   :  { %157 = vsyncadd [#allocation4], 4294967040 }
  0xf5   :  { %112 = vsyncpa [#allocation4], 1 }

// kernel: _lambda_.47
= control target key start
LH: loop header
LB: loop body
LE: loop exit
PB: predicated region body
PF: predicated region fallthrough
CT: control target
= control target key end

     0   :  { %vm19_vm0 = vcmask 261120   ;;  %v158_v0 = vmov 0.0   ;;  %vm159_vm1 = vmmov 0   ;;  %vm59_vm2 = vcmask 523264   ;;  %s213_s1 = inlined_call_operand.vmem [shape: bf16[64,32], index: 1, kind: input, shape index: {}]   ;;  %s214_s0 = inlined_call_operand.vmem [shape: f32[16,64], index: 0, kind: input, shape index: {}]   ;;  %s215_s2 = inlined_call_operand.vmem [shape: f32[1,32], index: 2, kind: input, shape index: {}]   ;;  %s216_s3 = inlined_call_operand.vmem [shape: f32[16,32], index: 3, kind: output, shape index: {}]  }
   0x1   :  { %140 = vmatprep.subr.bf16.mxu0 %v158_v0  ;;  %v154_v1 = vld [vmem:[%s213_s1] sm:$0xff]   ;;  %148 = vmatprep.mubr.msk.bf16.mxu0 %vm159_vm1, %v158_v0  ;;  %20 = vst.msk [vmem:[#allocation2] sm:$0xff] %vm19_vm0, %v158_v0  ;;  %21 = vst.msk [vmem:[#allocation2 + $0x8] sm:$0xff] %vm19_vm0, %v158_v0  ;;  %v155_v2 = vld [vmem:[%s213_s1 + $0x8] sm:$0xff]  }
   0x2   :  { %141 = vmatpush3.bf16.msra.mxu0 %v154_v1  ;;  %v156_v3 = vld [vmem:[%s213_s1 + $0x10] sm:$0xff]   ;;  %v157_v4 = vld [vmem:[%s213_s1 + $0x18] sm:$0xff]   ;;  %v24_v5 = vld [vmem:[%s214_s0] sm:$0xff] }
   0x3   :  { %142 = vmatprep.subr.bf16.mxu0 %v158_v0  ;;  %v25_v6 = vld [vmem:[%s214_s0 + $0x8] sm:$0xff]  ;;  %v134_v16 = vld [vmem:[%s215_s2] ss:$0 sm:$0xff] }
   0x4   :  { %v26_v7 = vpack.c.bf16 %v25_v6, %v24_v5 }
   0x6   :  { %143 = vmatpush3.bf16.msra.mxu0 %v155_v2 }
   0x7   :  { %144 = vmatprep.subr.bf16.mxu0 %v158_v0 }
   0x8   :  { %v22_v8 = vld [vmem:[#allocation2] sm:$0xff]  ;;  %v23_v10 = vld [vmem:[#allocation2 + $0x8] sm:$0xff] }
   0xa   :  { %145 = vmatpush3.bf16.msra.mxu0 %v156_v3 }
   0xb   :  { %146 = vmatprep.subr.bf16.mxu0 %v158_v0 }
   0xe   :  { %147 = vmatpush3.bf16.msra.mxu0 %v157_v4 }
  0x11   :  { %149 = vmatmul.mubr.msk.bf16.vlgmr.msra.gmra.mrb[0].mxu0 %vm59_vm2, %v26_v7 }
  0xe4   :  { %v97_v9 = vpop.f32.mrb[0].mxu0 }
  0xe5   :  { %v104_v11 = vadd.f32 %v97_v9, %v22_v8  ;;  %v150_v12 = vpop.f32.mrb[1].mxu0 }
  0xe6   :  { %v100_v13 = vpop.f32.mrb[2].mxu0 }
  0xe7   :  { %107 = vst.msk [vmem:[#allocation2] sm:$0xff] %vm19_vm0, %v104_v11  ;;  %v105_v14 = vadd.f32 %v100_v13, %v23_v10  ;;  %v151_v15 = vpop.f32.mrb[3].mxu0 }
  0xe9   :  { %108 = vst.msk [vmem:[#allocation2 + $0x8] sm:$0xff] %vm19_vm0, %v105_v14 }
  0xee   :  { %v112_v17 = vld [vmem:[#allocation2] sm:$0xff] }
  0xef   :  { %v121_v18 = vadd.f32 %v134_v16, %v112_v17 }
  0xf0   :  { %v113_v19 = vld [vmem:[#allocation2 + $0x8] sm:$0xff] }
  0xf1   :  { %123 = vst.msk [vmem:[%s216_s3] sm:$0xff] %vm19_vm0, %v121_v18  ;;  %v122_v20 = vadd.f32 %v134_v16, %v113_v19 }
  0xf3   :  { %124 = vst.msk [vmem:[%s216_s3 + $0x8] sm:$0xff] %vm19_vm0, %v122_v20 }

</bundles_post_ra>
